<compile_context>
chip_gen: v7x
topology: tpu7x:2x2x1
jax: 0.10.0
libtpu: 0.0.40
codegen_flags: <defaults>
</compile_context>

<pallas_src>
import functools

import jax
import jax.numpy as jnp
from jax.experimental import pallas as pl
from jax.experimental.pallas import tpu as pltpu

EPS = 1e-5


def _resblock_kernel(H, W, HWp, use_bf16, masks_ref, x_ref,
                     w1_ref, g1_ref, b1_ref, w2_ref, g2_ref, b2_ref,
                     o_ref, im2col_ref):
    # Per grid step (one batch element):
    #   x_ref / o_ref : (1, Cp, HWp)  channels on sublanes, padded H*W on lanes
    #   w*_ref        : (Cp, 9*Cp)    fused 3x3 weights, (cout,(ky,kx,cin)), mm dtype
    #   g*/b*_ref     : (Cp, 1)       f32
    #   masks_ref     : (9, HWp)      0/1 tap validity (incl. lane padding), mm dtype
    #   im2col_ref    : (9*Cp, HWp)   VMEM scratch, mm dtype
    HW = H * W
    mm_dtype = jnp.bfloat16 if use_bf16 else jnp.float32
    Cp = x_ref.shape[1]

    x = x_ref[0]                       # (Cp, HWp) f32
    masks = masks_ref[...]             # (9, HWp)  mm dtype

    def conv3x3(a, w_ref):
        # Build the im2col operand in the matmul dtype directly into the
        # scratch (roll -> mask*cast -> store, one pass per tap), then do ONE
        # fused MXU matmul (Cp, 9*Cp) @ (9*Cp, HWp).
        a_mm = a.astype(mm_dtype)
        for oy in (-1, 0, 1):
            for ox in (-1, 0, 1):
                k = (oy + 1) * 3 + (ox + 1)
                d = oy * W + ox
                t = a_mm if d == 0 else pltpu.roll(a_mm, shift=(-d) % HWp, axis=1)
                # masking the centre tap too keeps padded lanes exactly zero.
                im2col_ref[k * Cp:(k + 1) * Cp, :] = t * masks[k:k + 1, :]
        return jnp.dot(w_ref[...], im2col_ref[...],
                       preferred_element_type=jnp.float32)       # (Cp, HWp) f32

    def inst_norm(y, g_ref, b_ref):
        # Single-pass stats over the real H*W lanes (padded lanes hold exact
        # zeros), biased variance (PyTorch), affine folded into scale/shift.
        inv_n = 1.0 / HW
        mean = jnp.sum(y, axis=1, keepdims=True) * inv_n
        ex2 = jnp.sum(y * y, axis=1, keepdims=True) * inv_n
        var = jnp.maximum(ex2 - mean * mean, 0.0)
        scale = jax.lax.rsqrt(var + EPS) * g_ref[...]
        shift = b_ref[...] - mean * scale
        return y * scale + shift

    h = conv3x3(x, w1_ref)
    h = jnp.maximum(inst_norm(h, g1_ref, b1_ref), 0.0)           # ReLU
    h = conv3x3(h, w2_ref)
    h = inst_norm(h, g2_ref, b2_ref)
    o_ref[0] = x + h                                             # residual add


def residual_block(x_nchw, w1_oihw, g1, b1, w2_oihw, g2, b2, *,
                   use_bf16_matmul=True):
    """x: (B, C, H, W) f32; conv weights in PyTorch OIHW layout (C, C, 3, 3)."""
    B, C, H, W = x_nchw.shape
    HW = H * W
    HWp = max(128, ((HW + 127) // 128) * 128)       # lane-dense (unmasked) stores
    Cp = max(16, ((C + 15) // 16) * 16)             # bf16 sublane tile (⊇ f32 tile)
    pad_c, pad_s = Cp - C, HWp - HW

    x_flat = jnp.pad(x_nchw.reshape(B, C, HW).astype(jnp.float32),
                     ((0, 0), (0, pad_c), (0, pad_s)))            # (B, Cp, HWp)

    w_dtype = jnp.bfloat16 if use_bf16_matmul else jnp.float32

    def prep_w(w_oihw):
        w = jnp.pad(w_oihw.astype(jnp.float32),
                    ((0, pad_c), (0, pad_c), (0, 0), (0, 0)))     # (Cp, Cp, 3, 3)
        # OIHW -> (cout, ky, kx, cin) -> (cout, 9*cin); matches the kernel's
        # tap ordering ((ky,kx) outer, cin inner).
        return jnp.transpose(w, (0, 2, 3, 1)).reshape(Cp, 9 * Cp).astype(w_dtype)

    def prep_v(v, fill):
        return jnp.pad(v.astype(jnp.float32), (0, pad_c),
                       constant_values=fill).reshape(Cp, 1)

    w1p, w2p = prep_w(w1_oihw), prep_w(w2_oihw)
    g1p, b1p = prep_v(g1, 1.0), prep_v(b1, 0.0)
    g2p, b2p = prep_v(g2, 1.0), prep_v(b2, 0.0)

    # 0/1 boundary masks over the padded flat-spatial axis; padded lanes are
    # masked in ALL taps so conv outputs (and hence norm statistics) on padded
    # lanes stay exactly zero.  Built host-side, stored in the matmul dtype.
    p = jnp.arange(HWp)
    hh, ww, in_img = p // W, p % W, p < HW
    masks = []
    for oy in (-1, 0, 1):
        for ox in (-1, 0, 1):
            masks.append(in_img & (hh + oy >= 0) & (hh + oy < H)
                         & (ww + ox >= 0) & (ww + ox < W))
    mask_arr = jnp.stack(masks, axis=0).astype(w_dtype)           # (9, HWp)

    # --- VMEM budget (per grid step) & explicit scoped limit -----------------
    mm_b = 2 if use_bf16_matmul else 4
    act = Cp * HWp * 4
    est = (2 * act + 2 * act                        # x / out blocks (double-buffered)
           + 2 * 2 * Cp * 9 * Cp * mm_b             # both fused weights
           + 2 * 9 * HWp * mm_b                     # masks
           + 9 * Cp * HWp * mm_b                    # im2col scratch
           + 6 * act)                               # h / norm temporaries
    try:
        phys = int(getattr(pltpu.get_tpu_info(), "vmem_capacity_bytes",
                           64 * 1024 * 1024))
    except Exception:  # pragma: no cover - conservative fallback (v7x per-TC)
        phys = 64 * 1024 * 1024
    vmem_limit = int(min(int(phys * 0.9), max(est + (4 << 20), 32 << 20)))
    # TODO(synk): for production StarGAN shapes (C=256, 64x64) on v7x (64 MiB
    # VMEM) add H-strip tiling (grid=(B, n_strips), 1-row halo, two-pass
    # per-channel stats) once `est` approaches the physical budget.

    flops = 2 * B * (2 * Cp * 9 * Cp * HWp)         # two fused matmuls per element
    bytes_acc = (2 * x_flat.size * 4 + (w1p.size + w2p.size + mask_arr.size) * mm_b)
    cost = pl.CostEstimate(flops=flops, transcendentals=2 * B * Cp,
                           bytes_accessed=bytes_acc)

    kern = functools.partial(_resblock_kernel, H, W, HWp, use_bf16_matmul)

    def bcast(shape):
        return pl.BlockSpec(shape, lambda b, _n=len(shape): (0,) * _n)

    out = pl.pallas_call(
        kern,
        out_shape=jax.ShapeDtypeStruct((B, Cp, HWp), jnp.float32),
        grid_spec=pltpu.PrefetchScalarGridSpec(
            num_scalar_prefetch=0,
            grid=(B,),
            # TODO(synk): for small-C / large-B configs, pack several batch
            # elements along the lane axis per grid step ((Cp,9Cp)@(9Cp,Bt*HWp))
            # to amortize weight residency; production C=128-256 needs no change.
            in_specs=[
                bcast((9, HWp)),                                   # masks
                pl.BlockSpec((1, Cp, HWp), lambda b: (b, 0, 0)),   # x
                bcast((Cp, 9 * Cp)), bcast((Cp, 1)), bcast((Cp, 1)),
                bcast((Cp, 9 * Cp)), bcast((Cp, 1)), bcast((Cp, 1)),
            ],
            out_specs=pl.BlockSpec((1, Cp, HWp), lambda b: (b, 0, 0)),
            scratch_shapes=[pltpu.VMEM((9 * Cp, HWp), w_dtype)],   # im2col
        ),
        compiler_params=pltpu.CompilerParams(
            dimension_semantics=("parallel",),        # batch elems independent
            vmem_limit_bytes=vmem_limit),
        cost_estimate=cost,
    )(mask_arr, x_flat, w1p, g1p, b1p, w2p, g2p, b2p)

    return out[:, :C, :HW].reshape(B, C, H, W)


def _ref_forward(x, w1, g1, b1, w2, g2, b2):
    """Pure-JAX reference matching the PyTorch module (NCHW)."""
    def conv(y, w):
        return jax.lax.conv_general_dilated(
            y, w, window_strides=(1, 1), padding=((1, 1), (1, 1)),
            dimension_numbers=("NCHW", "OIHW", "NCHW"))

    def inorm(y, g, b):
        mean = y.mean(axis=(2, 3), keepdims=True)
        var = ((y - mean) ** 2).mean(axis=(2, 3), keepdims=True)
        yhat = (y - mean) / jnp.sqrt(var + EPS)
        return yhat * g[None, :, None, None] + b[None, :, None, None]

    h = conv(x, w1)
    h = inorm(h, g1, b1)
    h = jnp.maximum(h, 0.0)
    h = conv(h, w2)
    h = inorm(h, g2, b2)
    return x + h


if __name__ == "__main__":
    B, C, H, W = 2, 4, 16, 16  # in_dim == out_dim (required by the residual add)

    key = jax.random.PRNGKey(0)
    kx, kw1, kw2, kg1, kb1, kg2, kb2 = jax.random.split(key, 7)

    x = jax.random.normal(kx, (B, C, H, W), jnp.float32)
    # Deterministic synthetic parameters (shapes match nn.Conv2d / InstanceNorm2d).
    w1 = jax.random.normal(kw1, (C, C, 3, 3), jnp.float32) * 0.2   # OIHW
    w2 = jax.random.normal(kw2, (C, C, 3, 3), jnp.float32) * 0.2   # OIHW
    g1 = 1.0 + 0.1 * jax.random.normal(kg1, (C,), jnp.float32)
    b1 = 0.1 * jax.random.normal(kb1, (C,), jnp.float32)
    g2 = 1.0 + 0.1 * jax.random.normal(kg2, (C,), jnp.float32)
    b2 = 0.1 * jax.random.normal(kb2, (C,), jnp.float32)

    ref = _ref_forward(x, w1, g1, b1, w2, g2, b2)

    # Exact-dtype path: tight tolerance proves the kernel numerics.
    out_f32 = jax.block_until_ready(
        residual_block(x, w1, g1, b1, w2, g2, b2, use_bf16_matmul=False))
    assert out_f32.shape == (B, C, H, W)
    err32 = jnp.max(jnp.abs(out_f32 - ref))
    assert jnp.allclose(out_f32, ref, atol=1e-3, rtol=1e-3), f"f32 max abs err {err32}"

    # Default fast path (bf16 MXU operands, f32 accumulation & norm).
    out_bf16 = jax.block_until_ready(residual_block(x, w1, g1, b1, w2, g2, b2))
    assert out_bf16.shape == (B, C, H, W)
    err16 = jnp.max(jnp.abs(out_bf16 - ref))
    assert jnp.allclose(out_bf16, ref, atol=5e-2, rtol=5e-2), f"bf16 max abs err {err16}"

    print("KERNEL_OK")
</pallas_src>

<mosaic_0001>
module attributes {stable_mosaic.version = 11 : i64} {
  func.func @_resblock_kernel(%arg0: i32, %arg1: memref<9x256xf32, #tpu.memory_space<vmem>>, %arg2: memref<1x16x256xf32, #tpu.memory_space<vmem>>, %arg3: memref<16x144xf32, #tpu.memory_space<vmem>>, %arg4: memref<16x1xf32, #tpu.memory_space<vmem>>, %arg5: memref<16x1xf32, #tpu.memory_space<vmem>>, %arg6: memref<16x144xf32, #tpu.memory_space<vmem>>, %arg7: memref<16x1xf32, #tpu.memory_space<vmem>>, %arg8: memref<16x1xf32, #tpu.memory_space<vmem>>, %arg9: memref<1x16x256xf32, #tpu.memory_space<vmem>>, %arg10: memref<144x256xf32, #tpu.memory_space<vmem>>) attributes {dimension_semantics = [#tpu.dimension_semantics<parallel>], iteration_bounds = array<i64: 2>, scalar_prefetch = 0 : i64, scratch_operands = 1 : i64, tpu.core_type = #tpu.core_type<tc>, window_params = [{pipeline_mode = #tpu.pipeline_mode<synchronous>, transform_indices = @transform_0, window_bounds = array<i64: 9, 256>}, {transform_indices = @transform_1, window_bounds = array<i64: 1, 16, 256>}, {pipeline_mode = #tpu.pipeline_mode<synchronous>, transform_indices = @transform_2, window_bounds = array<i64: 16, 144>}, {pipeline_mode = #tpu.pipeline_mode<synchronous>, transform_indices = @transform_3, window_bounds = array<i64: 16, 1>}, {pipeline_mode = #tpu.pipeline_mode<synchronous>, transform_indices = @transform_4, window_bounds = array<i64: 16, 1>}, {pipeline_mode = #tpu.pipeline_mode<synchronous>, transform_indices = @transform_5, window_bounds = array<i64: 16, 144>}, {pipeline_mode = #tpu.pipeline_mode<synchronous>, transform_indices = @transform_6, window_bounds = array<i64: 16, 1>}, {pipeline_mode = #tpu.pipeline_mode<synchronous>, transform_indices = @transform_7, window_bounds = array<i64: 16, 1>}, {transform_indices = @transform_8, window_bounds = array<i64: 1, 16, 256>}]} {
    %c0 = arith.constant 0 : index
    %c0_0 = arith.constant 0 : index
    %c0_1 = arith.constant 0 : index
    %0 = vector.load %arg2[%c0, %c0_0, %c0_1] : memref<1x16x256xf32, #tpu.memory_space<vmem>>, vector<1x16x256xf32>
    %1 = vector.shape_cast %0 : vector<1x16x256xf32> to vector<16x256xf32>
    %c0_2 = arith.constant 0 : index
    %c0_3 = arith.constant 0 : index
    %2 = vector.load %arg1[%c0_2, %c0_3] : memref<9x256xf32, #tpu.memory_space<vmem>>, vector<9x256xf32>
    %c17_i32 = arith.constant 17 : i32
    %3 = tpu.dynamic_rotate %1 by %c17_i32 dim 1 : vector<16x256xf32>, i32 -> vector<16x256xf32>
    %4 = vector.extract_strided_slice %2 {offsets = [0, 0], sizes = [1, 256], strides = [1, 1]} : vector<9x256xf32> to vector<1x256xf32>
    %5 = vector.broadcast %4 : vector<1x256xf32> to vector<16x256xf32>
    %6 = arith.mulf %3, %5 : vector<16x256xf32>
    %c0_4 = arith.constant 0 : index
    %c0_5 = arith.constant 0 : index
    %7 = vector.load %arg10[%c0_4, %c0_5] : memref<144x256xf32, #tpu.memory_space<vmem>>, vector<16x256xf32>
    tpu.vector_store %arg10[%c0_4, %c0_5], %6 {strides = array<i32>} : memref<144x256xf32, #tpu.memory_space<vmem>>, vector<16x256xf32>,
    %c16_i32 = arith.constant 16 : i32
    %8 = tpu.dynamic_rotate %1 by %c16_i32 dim 1 : vector<16x256xf32>, i32 -> vector<16x256xf32>
    %9 = vector.extract_strided_slice %2 {offsets = [1, 0], sizes = [1, 256], strides = [1, 1]} : vector<9x256xf32> to vector<1x256xf32>
    %10 = vector.broadcast %9 : vector<1x256xf32> to vector<16x256xf32>
    %11 = arith.mulf %8, %10 : vector<16x256xf32>
    %c16 = arith.constant 16 : index
    %c0_6 = arith.constant 0 : index
    %12 = vector.load %arg10[%c16, %c0_6] : memref<144x256xf32, #tpu.memory_space<vmem>>, vector<16x256xf32>
    tpu.vector_store %arg10[%c16, %c0_6], %11 {strides = array<i32>} : memref<144x256xf32, #tpu.memory_space<vmem>>, vector<16x256xf32>,
    %c15_i32 = arith.constant 15 : i32
    %13 = tpu.dynamic_rotate %1 by %c15_i32 dim 1 : vector<16x256xf32>, i32 -> vector<16x256xf32>
    %14 = vector.extract_strided_slice %2 {offsets = [2, 0], sizes = [1, 256], strides = [1, 1]} : vector<9x256xf32> to vector<1x256xf32>
    %15 = vector.broadcast %14 : vector<1x256xf32> to vector<16x256xf32>
    %16 = arith.mulf %13, %15 : vector<16x256xf32>
    %c32 = arith.constant 32 : index
    %c0_7 = arith.constant 0 : index
    %17 = vector.load %arg10[%c32, %c0_7] : memref<144x256xf32, #tpu.memory_space<vmem>>, vector<16x256xf32>
    tpu.vector_store %arg10[%c32, %c0_7], %16 {strides = array<i32>} : memref<144x256xf32, #tpu.memory_space<vmem>>, vector<16x256xf32>,
    %c1_i32 = arith.constant 1 : i32
    %18 = tpu.dynamic_rotate %1 by %c1_i32 dim 1 : vector<16x256xf32>, i32 -> vector<16x256xf32>
    %19 = vector.extract_strided_slice %2 {offsets = [3, 0], sizes = [1, 256], strides = [1, 1]} : vector<9x256xf32> to vector<1x256xf32>
    %20 = vector.broadcast %19 : vector<1x256xf32> to vector<16x256xf32>
    %21 = arith.mulf %18, %20 : vector<16x256xf32>
    %c48 = arith.constant 48 : index
    %c0_8 = arith.constant 0 : index
    %22 = vector.load %arg10[%c48, %c0_8] : memref<144x256xf32, #tpu.memory_space<vmem>>, vector<16x256xf32>
    tpu.vector_store %arg10[%c48, %c0_8], %21 {strides = array<i32>} : memref<144x256xf32, #tpu.memory_space<vmem>>, vector<16x256xf32>,
    %23 = vector.extract_strided_slice %2 {offsets = [4, 0], sizes = [1, 256], strides = [1, 1]} : vector<9x256xf32> to vector<1x256xf32>
    %24 = vector.broadcast %23 : vector<1x256xf32> to vector<16x256xf32>
    %25 = arith.mulf %1, %24 : vector<16x256xf32>
    %c64 = arith.constant 64 : index
    %c0_9 = arith.constant 0 : index
    %26 = vector.load %arg10[%c64, %c0_9] : memref<144x256xf32, #tpu.memory_space<vmem>>, vector<16x256xf32>
    tpu.vector_store %arg10[%c64, %c0_9], %25 {strides = array<i32>} : memref<144x256xf32, #tpu.memory_space<vmem>>, vector<16x256xf32>,
    %c255_i32 = arith.constant 255 : i32
    %27 = tpu.dynamic_rotate %1 by %c255_i32 dim 1 : vector<16x256xf32>, i32 -> vector<16x256xf32>
    %28 = vector.extract_strided_slice %2 {offsets = [5, 0], sizes = [1, 256], strides = [1, 1]} : vector<9x256xf32> to vector<1x256xf32>
    %29 = vector.broadcast %28 : vector<1x256xf32> to vector<16x256xf32>
    %30 = arith.mulf %27, %29 : vector<16x256xf32>
    %c80 = arith.constant 80 : index
    %c0_10 = arith.constant 0 : index
    %31 = vector.load %arg10[%c80, %c0_10] : memref<144x256xf32, #tpu.memory_space<vmem>>, vector<16x256xf32>
    tpu.vector_store %arg10[%c80, %c0_10], %30 {strides = array<i32>} : memref<144x256xf32, #tpu.memory_space<vmem>>, vector<16x256xf32>,
    %c241_i32 = arith.constant 241 : i32
    %32 = tpu.dynamic_rotate %1 by %c241_i32 dim 1 : vector<16x256xf32>, i32 -> vector<16x256xf32>
    %33 = vector.extract_strided_slice %2 {offsets = [6, 0], sizes = [1, 256], strides = [1, 1]} : vector<9x256xf32> to vector<1x256xf32>
    %34 = vector.broadcast %33 : vector<1x256xf32> to vector<16x256xf32>
    %35 = arith.mulf %32, %34 : vector<16x256xf32>
    %c96 = arith.constant 96 : index
    %c0_11 = arith.constant 0 : index
    %36 = vector.load %arg10[%c96, %c0_11] : memref<144x256xf32, #tpu.memory_space<vmem>>, vector<16x256xf32>
    tpu.vector_store %arg10[%c96, %c0_11], %35 {strides = array<i32>} : memref<144x256xf32, #tpu.memory_space<vmem>>, vector<16x256xf32>,
    %c240_i32 = arith.constant 240 : i32
    %37 = tpu.dynamic_rotate %1 by %c240_i32 dim 1 : vector<16x256xf32>, i32 -> vector<16x256xf32>
    %38 = vector.extract_strided_slice %2 {offsets = [7, 0], sizes = [1, 256], strides = [1, 1]} : vector<9x256xf32> to vector<1x256xf32>
    %39 = vector.broadcast %38 : vector<1x256xf32> to vector<16x256xf32>
    %40 = arith.mulf %37, %39 : vector<16x256xf32>
    %c112 = arith.constant 112 : index
    %c0_12 = arith.constant 0 : index
    %41 = vector.load %arg10[%c112, %c0_12] : memref<144x256xf32, #tpu.memory_space<vmem>>, vector<16x256xf32>
    tpu.vector_store %arg10[%c112, %c0_12], %40 {strides = array<i32>} : memref<144x256xf32, #tpu.memory_space<vmem>>, vector<16x256xf32>,
    %c239_i32 = arith.constant 239 : i32
    %42 = tpu.dynamic_rotate %1 by %c239_i32 dim 1 : vector<16x256xf32>, i32 -> vector<16x256xf32>
    %43 = vector.extract_strided_slice %2 {offsets = [8, 0], sizes = [1, 256], strides = [1, 1]} : vector<9x256xf32> to vector<1x256xf32>
    %44 = vector.broadcast %43 : vector<1x256xf32> to vector<16x256xf32>
    %45 = arith.mulf %42, %44 : vector<16x256xf32>
    %c128 = arith.constant 128 : index
    %c0_13 = arith.constant 0 : index
    %46 = vector.load %arg10[%c128, %c0_13] : memref<144x256xf32, #tpu.memory_space<vmem>>, vector<16x256xf32>
    tpu.vector_store %arg10[%c128, %c0_13], %45 {strides = array<i32>} : memref<144x256xf32, #tpu.memory_space<vmem>>, vector<16x256xf32>,
    %c0_14 = arith.constant 0 : index
    %c0_15 = arith.constant 0 : index
    %47 = vector.load %arg3[%c0_14, %c0_15] : memref<16x144xf32, #tpu.memory_space<vmem>>, vector<16x144xf32>
    %c0_16 = arith.constant 0 : index
    %c0_17 = arith.constant 0 : index
    %48 = vector.load %arg10[%c0_16, %c0_17] : memref<144x256xf32, #tpu.memory_space<vmem>>, vector<144x256xf32>
    %cst = arith.constant dense<0.000000e+00> : vector<16x256xf32>
    %49 = tpu.matmul %47, %48, %cst {dimension_numbers = #tpu.dot_dimension_numbers<[1], [0], [0], [1], [0, 0, 1, 1], [], []>} : vector<16x144xf32>, vector<144x256xf32>, vector<16x256xf32> -> vector<16x256xf32>
    %cst_18 = arith.constant dense<0.000000e+00> : vector<16xf32>
    %50 = vector.multi_reduction <add>, %49, %cst_18 [1] : vector<16x256xf32> to vector<16xf32>
    %51 = vector.shape_cast %50 : vector<16xf32> to vector<16x1xf32>
    %cst_19 = arith.constant 3.906250e-03 : f32
    %52 = vector.broadcast %cst_19 : f32 to vector<16x1xf32>
    %53 = arith.mulf %51, %52 : vector<16x1xf32>
    %54 = arith.mulf %49, %49 : vector<16x256xf32>
    %cst_20 = arith.constant dense<0.000000e+00> : vector<16xf32>
    %55 = vector.multi_reduction <add>, %54, %cst_20 [1] : vector<16x256xf32> to vector<16xf32>
    %56 = vector.shape_cast %55 : vector<16xf32> to vector<16x1xf32>
    %cst_21 = arith.constant 3.906250e-03 : f32
    %57 = vector.broadcast %cst_21 : f32 to vector<16x1xf32>
    %58 = arith.mulf %56, %57 : vector<16x1xf32>
    %59 = arith.mulf %53, %53 : vector<16x1xf32>
    %60 = arith.subf %58, %59 : vector<16x1xf32>
    %cst_22 = arith.constant 0.000000e+00 : f32
    %61 = vector.broadcast %cst_22 : f32 to vector<16x1xf32>
    %62 = arith.maximumf %60, %61 : vector<16x1xf32>
    %cst_23 = arith.constant 9.99999974E-6 : f32
    %63 = vector.broadcast %cst_23 : f32 to vector<16x1xf32>
    %64 = arith.addf %62, %63 : vector<16x1xf32>
    %65 = math.rsqrt %64 : vector<16x1xf32>
    %c0_24 = arith.constant 0 : index
    %c0_25 = arith.constant 0 : index
    %66 = vector.load %arg4[%c0_24, %c0_25] : memref<16x1xf32, #tpu.memory_space<vmem>>, vector<16x1xf32>
    %67 = arith.mulf %65, %66 : vector<16x1xf32>
    %c0_26 = arith.constant 0 : index
    %c0_27 = arith.constant 0 : index
    %68 = vector.load %arg5[%c0_26, %c0_27] : memref<16x1xf32, #tpu.memory_space<vmem>>, vector<16x1xf32>
    %69 = arith.mulf %53, %67 : vector<16x1xf32>
    %70 = arith.subf %68, %69 : vector<16x1xf32>
    %71 = vector.broadcast %67 : vector<16x1xf32> to vector<16x256xf32>
    %72 = arith.mulf %49, %71 : vector<16x256xf32>
    %73 = vector.broadcast %70 : vector<16x1xf32> to vector<16x256xf32>
    %74 = arith.addf %72, %73 : vector<16x256xf32>
    %cst_28 = arith.constant 0.000000e+00 : f32
    %75 = vector.broadcast %cst_28 : f32 to vector<16x256xf32>
    %76 = arith.maximumf %74, %75 : vector<16x256xf32>
    %c17_i32_29 = arith.constant 17 : i32
    %77 = tpu.dynamic_rotate %76 by %c17_i32_29 dim 1 : vector<16x256xf32>, i32 -> vector<16x256xf32>
    %78 = vector.extract_strided_slice %2 {offsets = [0, 0], sizes = [1, 256], strides = [1, 1]} : vector<9x256xf32> to vector<1x256xf32>
    %79 = vector.broadcast %78 : vector<1x256xf32> to vector<16x256xf32>
    %80 = arith.mulf %77, %79 : vector<16x256xf32>
    %c0_30 = arith.constant 0 : index
    %c0_31 = arith.constant 0 : index
    %81 = vector.load %arg10[%c0_30, %c0_31] : memref<144x256xf32, #tpu.memory_space<vmem>>, vector<16x256xf32>
    tpu.vector_store %arg10[%c0_30, %c0_31], %80 {strides = array<i32>} : memref<144x256xf32, #tpu.memory_space<vmem>>, vector<16x256xf32>,
    %c16_i32_32 = arith.constant 16 : i32
    %82 = tpu.dynamic_rotate %76 by %c16_i32_32 dim 1 : vector<16x256xf32>, i32 -> vector<16x256xf32>
    %83 = vector.extract_strided_slice %2 {offsets = [1, 0], sizes = [1, 256], strides = [1, 1]} : vector<9x256xf32> to vector<1x256xf32>
    %84 = vector.broadcast %83 : vector<1x256xf32> to vector<16x256xf32>
    %85 = arith.mulf %82, %84 : vector<16x256xf32>
    %c16_33 = arith.constant 16 : index
    %c0_34 = arith.constant 0 : index
    %86 = vector.load %arg10[%c16_33, %c0_34] : memref<144x256xf32, #tpu.memory_space<vmem>>, vector<16x256xf32>
    tpu.vector_store %arg10[%c16_33, %c0_34], %85 {strides = array<i32>} : memref<144x256xf32, #tpu.memory_space<vmem>>, vector<16x256xf32>,
    %c15_i32_35 = arith.constant 15 : i32
    %87 = tpu.dynamic_rotate %76 by %c15_i32_35 dim 1 : vector<16x256xf32>, i32 -> vector<16x256xf32>
    %88 = vector.extract_strided_slice %2 {offsets = [2, 0], sizes = [1, 256], strides = [1, 1]} : vector<9x256xf32> to vector<1x256xf32>
    %89 = vector.broadcast %88 : vector<1x256xf32> to vector<16x256xf32>
    %90 = arith.mulf %87, %89 : vector<16x256xf32>
    %c32_36 = arith.constant 32 : index
    %c0_37 = arith.constant 0 : index
    %91 = vector.load %arg10[%c32_36, %c0_37] : memref<144x256xf32, #tpu.memory_space<vmem>>, vector<16x256xf32>
    tpu.vector_store %arg10[%c32_36, %c0_37], %90 {strides = array<i32>} : memref<144x256xf32, #tpu.memory_space<vmem>>, vector<16x256xf32>,
    %c1_i32_38 = arith.constant 1 : i32
    %92 = tpu.dynamic_rotate %76 by %c1_i32_38 dim 1 : vector<16x256xf32>, i32 -> vector<16x256xf32>
    %93 = vector.extract_strided_slice %2 {offsets = [3, 0], sizes = [1, 256], strides = [1, 1]} : vector<9x256xf32> to vector<1x256xf32>
    %94 = vector.broadcast %93 : vector<1x256xf32> to vector<16x256xf32>
    %95 = arith.mulf %92, %94 : vector<16x256xf32>
    %c48_39 = arith.constant 48 : index
    %c0_40 = arith.constant 0 : index
    %96 = vector.load %arg10[%c48_39, %c0_40] : memref<144x256xf32, #tpu.memory_space<vmem>>, vector<16x256xf32>
    tpu.vector_store %arg10[%c48_39, %c0_40], %95 {strides = array<i32>} : memref<144x256xf32, #tpu.memory_space<vmem>>, vector<16x256xf32>,
    %97 = vector.extract_strided_slice %2 {offsets = [4, 0], sizes = [1, 256], strides = [1, 1]} : vector<9x256xf32> to vector<1x256xf32>
    %98 = vector.broadcast %97 : vector<1x256xf32> to vector<16x256xf32>
    %99 = arith.mulf %76, %98 : vector<16x256xf32>
    %c64_41 = arith.constant 64 : index
    %c0_42 = arith.constant 0 : index
    %100 = vector.load %arg10[%c64_41, %c0_42] : memref<144x256xf32, #tpu.memory_space<vmem>>, vector<16x256xf32>
    tpu.vector_store %arg10[%c64_41, %c0_42], %99 {strides = array<i32>} : memref<144x256xf32, #tpu.memory_space<vmem>>, vector<16x256xf32>,
    %c255_i32_43 = arith.constant 255 : i32
    %101 = tpu.dynamic_rotate %76 by %c255_i32_43 dim 1 : vector<16x256xf32>, i32 -> vector<16x256xf32>
    %102 = vector.extract_strided_slice %2 {offsets = [5, 0], sizes = [1, 256], strides = [1, 1]} : vector<9x256xf32> to vector<1x256xf32>
    %103 = vector.broadcast %102 : vector<1x256xf32> to vector<16x256xf32>
    %104 = arith.mulf %101, %103 : vector<16x256xf32>
    %c80_44 = arith.constant 80 : index
    %c0_45 = arith.constant 0 : index
    %105 = vector.load %arg10[%c80_44, %c0_45] : memref<144x256xf32, #tpu.memory_space<vmem>>, vector<16x256xf32>
    tpu.vector_store %arg10[%c80_44, %c0_45], %104 {strides = array<i32>} : memref<144x256xf32, #tpu.memory_space<vmem>>, vector<16x256xf32>,
    %c241_i32_46 = arith.constant 241 : i32
    %106 = tpu.dynamic_rotate %76 by %c241_i32_46 dim 1 : vector<16x256xf32>, i32 -> vector<16x256xf32>
    %107 = vector.extract_strided_slice %2 {offsets = [6, 0], sizes = [1, 256], strides = [1, 1]} : vector<9x256xf32> to vector<1x256xf32>
    %108 = vector.broadcast %107 : vector<1x256xf32> to vector<16x256xf32>
    %109 = arith.mulf %106, %108 : vector<16x256xf32>
    %c96_47 = arith.constant 96 : index
    %c0_48 = arith.constant 0 : index
    %110 = vector.load %arg10[%c96_47, %c0_48] : memref<144x256xf32, #tpu.memory_space<vmem>>, vector<16x256xf32>
    tpu.vector_store %arg10[%c96_47, %c0_48], %109 {strides = array<i32>} : memref<144x256xf32, #tpu.memory_space<vmem>>, vector<16x256xf32>,
    %c240_i32_49 = arith.constant 240 : i32
    %111 = tpu.dynamic_rotate %76 by %c240_i32_49 dim 1 : vector<16x256xf32>, i32 -> vector<16x256xf32>
    %112 = vector.extract_strided_slice %2 {offsets = [7, 0], sizes = [1, 256], strides = [1, 1]} : vector<9x256xf32> to vector<1x256xf32>
    %113 = vector.broadcast %112 : vector<1x256xf32> to vector<16x256xf32>
    %114 = arith.mulf %111, %113 : vector<16x256xf32>
    %c112_50 = arith.constant 112 : index
    %c0_51 = arith.constant 0 : index
    %115 = vector.load %arg10[%c112_50, %c0_51] : memref<144x256xf32, #tpu.memory_space<vmem>>, vector<16x256xf32>
    tpu.vector_store %arg10[%c112_50, %c0_51], %114 {strides = array<i32>} : memref<144x256xf32, #tpu.memory_space<vmem>>, vector<16x256xf32>,
    %c239_i32_52 = arith.constant 239 : i32
    %116 = tpu.dynamic_rotate %76 by %c239_i32_52 dim 1 : vector<16x256xf32>, i32 -> vector<16x256xf32>
    %117 = vector.extract_strided_slice %2 {offsets = [8, 0], sizes = [1, 256], strides = [1, 1]} : vector<9x256xf32> to vector<1x256xf32>
    %118 = vector.broadcast %117 : vector<1x256xf32> to vector<16x256xf32>
    %119 = arith.mulf %116, %118 : vector<16x256xf32>
    %c128_53 = arith.constant 128 : index
    %c0_54 = arith.constant 0 : index
    %120 = vector.load %arg10[%c128_53, %c0_54] : memref<144x256xf32, #tpu.memory_space<vmem>>, vector<16x256xf32>
    tpu.vector_store %arg10[%c128_53, %c0_54], %119 {strides = array<i32>} : memref<144x256xf32, #tpu.memory_space<vmem>>, vector<16x256xf32>,
    %c0_55 = arith.constant 0 : index
    %c0_56 = arith.constant 0 : index
    %121 = vector.load %arg6[%c0_55, %c0_56] : memref<16x144xf32, #tpu.memory_space<vmem>>, vector<16x144xf32>
    %c0_57 = arith.constant 0 : index
    %c0_58 = arith.constant 0 : index
    %122 = vector.load %arg10[%c0_57, %c0_58] : memref<144x256xf32, #tpu.memory_space<vmem>>, vector<144x256xf32>
    %cst_59 = arith.constant dense<0.000000e+00> : vector<16x256xf32>
    %123 = tpu.matmul %121, %122, %cst_59 {dimension_numbers = #tpu.dot_dimension_numbers<[1], [0], [0], [1], [0, 0, 1, 1], [], []>} : vector<16x144xf32>, vector<144x256xf32>, vector<16x256xf32> -> vector<16x256xf32>
    %cst_60 = arith.constant dense<0.000000e+00> : vector<16xf32>
    %124 = vector.multi_reduction <add>, %123, %cst_60 [1] : vector<16x256xf32> to vector<16xf32>
    %125 = vector.shape_cast %124 : vector<16xf32> to vector<16x1xf32>
    %cst_61 = arith.constant 3.906250e-03 : f32
    %126 = vector.broadcast %cst_61 : f32 to vector<16x1xf32>
    %127 = arith.mulf %125, %126 : vector<16x1xf32>
    %128 = arith.mulf %123, %123 : vector<16x256xf32>
    %cst_62 = arith.constant dense<0.000000e+00> : vector<16xf32>
    %129 = vector.multi_reduction <add>, %128, %cst_62 [1] : vector<16x256xf32> to vector<16xf32>
    %130 = vector.shape_cast %129 : vector<16xf32> to vector<16x1xf32>
    %cst_63 = arith.constant 3.906250e-03 : f32
    %131 = vector.broadcast %cst_63 : f32 to vector<16x1xf32>
    %132 = arith.mulf %130, %131 : vector<16x1xf32>
    %133 = arith.mulf %127, %127 : vector<16x1xf32>
    %134 = arith.subf %132, %133 : vector<16x1xf32>
    %cst_64 = arith.constant 0.000000e+00 : f32
    %135 = vector.broadcast %cst_64 : f32 to vector<16x1xf32>
    %136 = arith.maximumf %134, %135 : vector<16x1xf32>
    %cst_65 = arith.constant 9.99999974E-6 : f32
    %137 = vector.broadcast %cst_65 : f32 to vector<16x1xf32>
    %138 = arith.addf %136, %137 : vector<16x1xf32>
    %139 = math.rsqrt %138 : vector<16x1xf32>
    %c0_66 = arith.constant 0 : index
    %c0_67 = arith.constant 0 : index
    %140 = vector.load %arg7[%c0_66, %c0_67] : memref<16x1xf32, #tpu.memory_space<vmem>>, vector<16x1xf32>
    %141 = arith.mulf %139, %140 : vector<16x1xf32>
    %c0_68 = arith.constant 0 : index
    %c0_69 = arith.constant 0 : index
    %142 = vector.load %arg8[%c0_68, %c0_69] : memref<16x1xf32, #tpu.memory_space<vmem>>, vector<16x1xf32>
    %143 = arith.mulf %127, %141 : vector<16x1xf32>
    %144 = arith.subf %142, %143 : vector<16x1xf32>
    %145 = vector.broadcast %141 : vector<16x1xf32> to vector<16x256xf32>
    %146 = arith.mulf %123, %145 : vector<16x256xf32>
    %147 = vector.broadcast %144 : vector<16x1xf32> to vector<16x256xf32>
    %148 = arith.addf %146, %147 : vector<16x256xf32>
    %149 = arith.addf %1, %148 : vector<16x256xf32>
    %c0_70 = arith.constant 0 : index
    %c0_71 = arith.constant 0 : index
    %c0_72 = arith.constant 0 : index
    %150 = vector.load %arg9[%c0_70, %c0_71, %c0_72] : memref<1x16x256xf32, #tpu.memory_space<vmem>>, vector<1x16x256xf32>
    %151 = vector.shape_cast %150 : vector<1x16x256xf32> to vector<16x256xf32>
    %152 = vector.shape_cast %149 : vector<16x256xf32> to vector<1x16x256xf32>
    tpu.vector_store %arg9[%c0_70, %c0_71, %c0_72], %152 {strides = array<i32>} : memref<1x16x256xf32, #tpu.memory_space<vmem>>, vector<1x16x256xf32>,
    return
  }
  func.func @transform_0(%arg0: i32) -> (i32, i32) {
    %c0_i32 = arith.constant 0 : i32
    %c0_i32_0 = arith.constant 0 : i32
    %c0_i32_1 = arith.constant 0 : i32
    return %c0_i32, %c0_i32_0 : i32, i32
  }
  func.func @transform_1(%arg0: i32) -> (i32, i32, i32) {
    %c0_i32 = arith.constant 0 : i32
    %c0_i32_0 = arith.constant 0 : i32
    %c0_i32_1 = arith.constant 0 : i32
    return %arg0, %c0_i32, %c0_i32_0 : i32, i32, i32
  }
  func.func @transform_2(%arg0: i32) -> (i32, i32) {
    %c0_i32 = arith.constant 0 : i32
    %c0_i32_0 = arith.constant 0 : i32
    %c0_i32_1 = arith.constant 0 : i32
    return %c0_i32, %c0_i32_0 : i32, i32
  }
  func.func @transform_3(%arg0: i32) -> (i32, i32) {
    %c0_i32 = arith.constant 0 : i32
    %c0_i32_0 = arith.constant 0 : i32
    %c0_i32_1 = arith.constant 0 : i32
    return %c0_i32, %c0_i32_0 : i32, i32
  }
  func.func @transform_4(%arg0: i32) -> (i32, i32) {
    %c0_i32 = arith.constant 0 : i32
    %c0_i32_0 = arith.constant 0 : i32
    %c0_i32_1 = arith.constant 0 : i32
    return %c0_i32, %c0_i32_0 : i32, i32
  }
  func.func @transform_5(%arg0: i32) -> (i32, i32) {
    %c0_i32 = arith.constant 0 : i32
    %c0_i32_0 = arith.constant 0 : i32
    %c0_i32_1 = arith.constant 0 : i32
    return %c0_i32, %c0_i32_0 : i32, i32
  }
  func.func @transform_6(%arg0: i32) -> (i32, i32) {
    %c0_i32 = arith.constant 0 : i32
    %c0_i32_0 = arith.constant 0 : i32
    %c0_i32_1 = arith.constant 0 : i32
    return %c0_i32, %c0_i32_0 : i32, i32
  }
  func.func @transform_7(%arg0: i32) -> (i32, i32) {
    %c0_i32 = arith.constant 0 : i32
    %c0_i32_0 = arith.constant 0 : i32
    %c0_i32_1 = arith.constant 0 : i32
    return %c0_i32, %c0_i32_0 : i32, i32
  }
  func.func @transform_8(%arg0: i32) -> (i32, i32, i32) {
    %c0_i32 = arith.constant 0 : i32
    %c0_i32_0 = arith.constant 0 : i32
    %c0_i32_1 = arith.constant 0 : i32
    return %arg0, %c0_i32, %c0_i32_0 : i32, i32, i32
  }
}

</mosaic_0001>

<bundles_post_ra>
// kernel: tpu_custom_call.1
= control target key start
LH: loop header
LB: loop body
LE: loop exit
PB: predicated region body
PF: predicated region fallthrough
CT: control target
= control target key end

     0   :  { %13 = vsyncpa [#allocation4], 0  ;;  %s2363_s0 = inlined_call_operand.hbm [shape: f32[9,256], index: 0, kind: input, shape index: {}]   ;;  %s2364_s1 = inlined_call_operand.vmem [shape: f32[2,16,256], index: 1, kind: input, shape index: {}]   ;;  %s2365_s2 = inlined_call_operand.hbm [shape: f32[16,144], index: 2, kind: input, shape index: {}]   ;;  %s2366_s3 = inlined_call_operand.vmem [shape: f32[16,1], index: 3, kind: input, shape index: {}]   ;;  %s2367_s4 = inlined_call_operand.vmem [shape: f32[16,1], index: 4, kind: input, shape index: {}]   ;;  %s2368_s5 = inlined_call_operand.hbm [shape: f32[16,144], index: 5, kind: input, shape index: {}]   ;;  %s2369_s6 = inlined_call_operand.vmem [shape: f32[16,1], index: 6, kind: input, shape index: {}]   ;;  %s2370_s7 = inlined_call_operand.vmem [shape: f32[16,1], index: 7, kind: input, shape index: {}]   ;;  %s2371_s8 = inlined_call_operand.hbm [shape: f32[2,16,256], index: 8, kind: output, shape index: {}]  }
   0x1   :  { %14 = vsyncpa [#allocation7], 0 }
   0x2   :  { %15 = vsyncpa [#allocation5], 0 }
   0x3   :  { %17 = vsyncpa [#allocation5 + $0x1], 0  ;;  %s1687_s27 = smov 0   ;;  %s1689_s28 = smov 0  }
   0x4   :  { %s1691_s29 = smov 0   ;;  %s1693_s30 = smov 0  }
   0x5 LB: > { %2379 = sst [smem:[#allocation13_spill]] %s1620_s29  ;;  %s1708_s9 = sadd.s32 4294967295, %s1624_s30   ;;  %s1624_s30 = sphi %s1693_s30, %s2396_s30   ;;  %s1620_s29 = sphi %s1691_s29, %s2398_s29   ;;  %s1616_s28 = sphi %s1689_s28, %s2400_s28   ;;  %s1612_s27 = sphi %s1687_s27, %s2399_s27  }
   0x6   : > { %s1276_s10 = sadd.s32 4294967294, %s1624_s30   ;;  %s1712_s11 = sadd.s32 1, %s1624_s30  }
   0x7   : > { %2380 = sst [smem:[#allocation14_spill]] %s1712_s11  ;;  %s203_s12 = sadd.s32 1, %s1620_s29 }
   0x8   : > { %s200_s13 = ssub.s32 %s1624_s30, %s1712_s11  ;;  %p213_p0 = scmp.ne.s32.totalorder %s1620_s29, %s1616_s28 }
   0x9   : > { %p201_p1 = scmp.eq.s32.totalorder %s200_s13, 0  ;;  %p214_p2 = scmp.eq.s32.totalorder %s1708_s9, 1 }
   0xa   : > { %p219_p3 = scmp.ne.s32.totalorder %s1616_s28, %s1612_s27  ;;  %p220_p4 = scmp.eq.s32.totalorder %s1276_s10, 1 }
   0xb   : > { %s1723_s14 = scalar_select %p201_p1, %s1620_s29, %s203_s12  }
   0xc   : > { %p1725_p5 = por %p214_p2, %p213_p0  ;;  %p1729_p6 = por %p220_p4, %p219_p3 }
   0xd   : > { %2381 = sst [smem:[#allocation15_spill]] %s1723_s14  ;;  %p1277_p7 = scmp.ge.s32.totalorder %s1624_s30, 1 }
   0xe   : > { %s2382_s15 = scalar_select %p1725_p5, 1, 0 }
   0xf   : > { %s2383_s16 = scalar_select %p1729_p6, 1, 0 }
  0x10   : > { %p227_p8 = scmp.lt.s32.totalorder %s1624_s30, 3  ;;  %p2372_p9 = scmp.eq.s32.totalorder %s1708_s9, 0 }
  0x11   : > { %2384 = sst [smem:[#allocation16_spill]] %s2383_s16  ;;  %s1626_s18 = smov [#allocation6]  }
  0x12   : > { %p1736_p10 = pnand %p1277_p7, %p227_p8  ;;  %s252_s19 = sshll.u32 %s1626_s18, 4  ;;  %s1742_s19 = int_to_ptr.vmem [resolvable:$true] %s252_s19 }
  0x13   : > { %s1627_s21 = smov [#allocation3]   ;;  %s1628_s23 = smov [#allocation8]  }
  0x14   : > { %s2385_s17 = scalar_select %p1736_p10, 1, 0 }
  0x15   : > { %p1388_p11 = pneg %p1736_p10  ;;  %s239_s22 = sshll.u32 %s1627_s21, 4  ;;  %s1750_s22 = int_to_ptr.vmem [resolvable:$true] %s239_s22 }
  0x16   : > { %s1752_s24 = sshll.u32 %s1628_s23, 4  ;;  %s1470_s10 = scalar_lea.hbm %s2365_s2, 512  ;;  %s272_s24 = int_to_ptr.vmem [resolvable:$true] %s1752_s24 }
  0x17   : > { %p1746_p12 = pnand %p2372_p9, %p1388_p11  ;;  %p1471_p13 = scmp.ne.s32.totalorder %s2365_s2, %s1470_s10 }
  0x18   : > { %p1477_p3 = scmp.lt.u32.totalorder %s1470_s10, %s2365_s2 }
  0x19   : > { %p1762_p0 = pneg %p1746_p12 }
  0x1b   : > { %p1473_p1 = pnand %p1762_p0, %p1471_p13 }
  0x1d   : > { %p1474_p2 = pneg %p1473_p1 }
  0x1f   : > { %p1479_p4 = pnand %p1477_p3, %p1474_p2 }
  0x21   : > { %1482 = shalt.err (!%p1479_p4)
}
  0x22   : > { %s1483_s25 = scalar_lea.vmem %s1742_s19, 512  ;;  %p1491_p9 = scmp.lt.s32.totalorder %s1742_s19, %s1742_s19 }
  0x23   : > { %p1484_p7 = scmp.ne.s32.totalorder %s1742_s19, %s1483_s25  ;;  %p1492_p6 = scmp.lt.s32.totalorder %s1483_s25, %s1483_s25 }
  0x25   : > { %p1486_p8 = pnand %p1484_p7, %p1762_p0  ;;  %p1493_p13 = por %p1492_p6, %p1491_p9 }
  0x27   : > { %p1487_p11 = pneg %p1486_p8 }
  0x29   : > { %p1494_p1 = pnand %p1493_p13, %p1487_p11 }
  0x2b   : > { %1497 = shalt.err (!%p1494_p1)
}
  0x2c   : > { %s1629_s26 = smov 256   ;;  %s1630_s10 = smov 16  }
  0x2d   : > { %1394 = dma.hbm_to_vmem [thread:$0]  (!%p1746_p12), %s2365_s2, 512, %s1742_s19, [#allocation7], %s1629_s26, %s1629_s26, %s1630_s10  }
  0x2e   : > { %s1498_s25 = scalar_lea.hbm %s2363_s0, 512 }
  0x2f   : > { %p1499_p6 = scmp.ne.s32.totalorder %s2363_s0, %s1498_s25  ;;  %p1505_p3 = scmp.lt.u32.totalorder %s1498_s25, %s2363_s0 }
  0x31   : > { %p1501_p9 = pnand %p1499_p6, %p1762_p0 }
  0x33   : > { %p1502_p2 = pneg %p1501_p9 }
  0x35   : > { %p1507_p4 = pnand %p1505_p3, %p1502_p2 }
  0x37   : > { %1510 = shalt.err (!%p1507_p4)
}
  0x38   : > { %s1511_s19 = scalar_lea.vmem %s1750_s22, 512  ;;  %p1519_p13 = scmp.lt.s32.totalorder %s1750_s22, %s1750_s22 }
  0x39   : > { %p1512_p7 = scmp.ne.s32.totalorder %s1750_s22, %s1511_s19  ;;  %p1520_p1 = scmp.lt.s32.totalorder %s1511_s19, %s1511_s19 }
  0x3b   : > { %p1514_p8 = pnand %p1512_p7, %p1762_p0  ;;  %p1521_p6 = por %p1520_p1, %p1519_p13 }
  0x3d   : > { %p1515_p11 = pneg %p1514_p8 }
  0x3f   : > { %p1522_p9 = pnand %p1521_p6, %p1515_p11 }
  0x41   : > { %1525 = shalt.err (!%p1522_p9)
}
  0x42   : > { %1391 = dma.hbm_to_vmem [thread:$0]  (!%p1746_p12), %s2363_s0, 512, %s1750_s22, [#allocation4], %s1629_s26, %s1629_s26, %s1630_s10  }
  0x43   : > { %s1526_s12 = scalar_lea.hbm %s2368_s5, 512 }
  0x44   : > { %p1527_p2 = scmp.ne.s32.totalorder %s2368_s5, %s1526_s12  ;;  %p1533_p7 = scmp.lt.u32.totalorder %s1526_s12, %s2368_s5 }
  0x46   : > { %p1529_p3 = pnand %p1527_p2, %p1762_p0 }
  0x48   : > { %p1530_p4 = pneg %p1529_p3 }
  0x4a   : > { %p1535_p8 = pnand %p1533_p7, %p1530_p4 }
  0x4c   : > { %1538 = shalt.err (!%p1535_p8)
}
  0x4d   : > { %s1539_s19 = scalar_lea.vmem %s272_s24, 512  ;;  %p1547_p6 = scmp.lt.s32.totalorder %s272_s24, %s272_s24 }
  0x4e   : > { %p1540_p11 = scmp.ne.s32.totalorder %s272_s24, %s1539_s19  ;;  %p1548_p9 = scmp.lt.s32.totalorder %s1539_s19, %s1539_s19 }
  0x50   : > { %p1542_p13 = pnand %p1540_p11, %p1762_p0  ;;  %p1549_p5 = por %p1548_p9, %p1547_p6 }
  0x52   : > { %p1543_p1 = pneg %p1542_p13 }
  0x54   : > { %p1550_p10 = pnand %p1549_p5, %p1543_p1 }
  0x56   : > { %1553 = shalt.err (!%p1550_p10)
}
  0x57   : > { %1397 = dma.hbm_to_vmem [thread:$0]  (!%p1746_p12), %s2368_s5, 512, %s272_s24, [#allocation7], %s1629_s26, %s1629_s26, %s1630_s10  }
  0x58   : > { %p2388_p2 = scmp.ne.s32.totalorder %s2385_s17, 0 }
  0x59   : > { %p2389_p0 = scmp.eq.s32.totalorder (!%p2388_p2), %s1708_s9, 0 }
  0x5a   : > { %301 = sbr.rel (%p2388_p2) target bundleno = 1543 (0x607), region = 52 }
  0x61   : > { %1599 = dma.done.wait (%p2389_p0), [#allocation4], 512   ;;  %p2390_p3 = pmov %p2389_p0 }
  0x62   : > { %p2391_p5 = pmov %p2389_p0 }
  0x63   : > { %1601 = vsyncadd (%p2390_p3), [#allocation4], 4294966784 }
  0x64   : > { %1603 = dma.done.wait (%p2391_p5), [#allocation7], 1024   ;;  %p2392_p10 = pmov %p2389_p0 }
  0x65   : > { %p343_p4 = scmp.lt.s32.totalorder %s1708_s9, 1  ;;  %s1631_s10 = smov 17   ;;  %v607_v4 = vld [vmem:[#allocation6 + $0x8] sm:$0xff]  ;;  %vm646_vm0 = vcmask 130048   ;;  %v364_v5 = vlaneseq  ;;  %v1933_v9 = vld [vmem:[#allocation3] sm:$0xff] }
  0x66   : > { %1605 = vsyncadd (%p2392_p10), [#allocation7], 4294966272  ;;  %s1632_s11 = smov 16   ;;  %s1633_s14 = smov 15   ;;  %1291 = vmatprep.mubr.msk.f32.mxu0 %vm646_vm0, %v607_v4  ;;  %v1935_v10 = vld [vmem:[#allocation3 + $0x8] sm:$0xff] }
  0x67   : > { %s344_s20 = scalar_select %p343_p4, %s1708_s9, 1  ;;  %v1928_v6 = vshrl.u32 %v364_v5, 7  ;;  %v1930_v7 = vand.u32 127, %v364_v5 }
  0x68   : > { %s1634_s16 = smov 1   ;;  %s1635_s12 = smov 127  }
  0x69   : > { %s1300_s24 = sshll.u32 %s344_s20, 5  ;;  %s1636_s13 = smov 113   ;;  %v373_v8 = vsub.s32 0, %v1928_v6  ;;  %vm366_vm1 = vcmp.lt.s32.totalorder %v1930_v7, 17  ;;  %v402_v21 = vsub.s32 1, %v1928_v6  ;;  %vm395_vm2 = vcmp.lt.s32.totalorder %v1930_v7, 16 }
  0x6a   : > { %s1849_s26 = scalar_lea.vmem %s2364_s1, %s1300_s24  ;;  %s1637_s21 = smov 112   ;;  %v431_v34 = vsub.s32 2, %v1928_v6  ;;  %vm424_vm3 = vcmp.lt.s32.totalorder %v1930_v7, 15  ;;  %v460_v51 = vsub.s32 3, %v1928_v6  ;;  %v476_v52 = vsub.s32 4, %v1928_v6 }
  0x6b   : > { %v1852_v0 = vld [vmem:[%s1849_s26 + $0x8] sm:$0xff]  ;;  %v1855_v1 = vld [vmem:[%s1849_s26] sm:$0xff]  ;;  %v1862_v2 = vld [vmem:[%s1849_s26 + $0x18] sm:$0xff]  ;;  %s1638_s23 = smov 111   ;;  %v1939_v13 = vrot.slane %v1933_v9, %v373_v8  ;;  %v1942_v14 = vrot.slane %v1935_v10, %v373_v8  ;;  %v1959_v30 = vrot.slane %v1933_v9, %v402_v21  ;;  %v1962_v31 = vrot.slane %v1935_v10, %v402_v21  ;;  %s340_s19 = sand.u32 1, %s1616_s28  }
  0x6c   : > { %360 = vrot.lane.b32.xlu1 %v1852_v0, %s1631_s10  ;;  %356 = vrot.lane.b32.xlu0 %v1855_v1, %s1631_s10  ;;  %v1865_v3 = vld [vmem:[%s1849_s26 + $0x10] sm:$0xff]  ;;  %v1979_v47 = vrot.slane %v1933_v9, %v431_v34  ;;  %v1982_v48 = vrot.slane %v1935_v10, %v431_v34  ;;  %v1999_v5 = vrot.slane %v1935_v10, %v476_v52  ;;  %vm453_vm4 = vcmp.lt.s32.totalorder %v1930_v7, 1  ;;  %s1286_s22 = sshll.u32 %s340_s19, 5  ;;  %s1301_s24 = sshll.u32 %s1708_s9, 9 }
  0x6d   : > { %v2003_v8 = vrot.slane %v1933_v9, %v460_v51  ;;  %vm498_vm5 = vcmp.lt.s32.totalorder %v1930_v7, 127  ;;  %vm527_vm6 = vcmp.lt.s32.totalorder %v1930_v7, 113  ;;  %vm556_vm7 = vcmp.lt.s32.totalorder %v1930_v7, 112  ;;  %s342_s29 = scalar_lea.vmem [#allocation9], %s1286_s22  ;;  %s2321_s9 = scalar_lea.sflag [#allocation5], %s340_s19 }
  0x6e   : > { %vm585_vm8 = vcmp.lt.s32.totalorder %v1930_v7, 111  ;;  %s1183_s20 = sshll.u32 %s342_s29, 4  ;;  %p2393_p7 = scmp.ne.s32.totalorder %s2382_s15, 0  ;;  %s2310_s20 = int_to_ptr.vmem [resolvable:$true] %s1183_s20 }
  0x70   : > { %362 = vrot.lane.b32.xlu1 %v1862_v2, %s1631_s10  ;;  %358 = vrot.lane.b32.xlu0 %v1865_v3, %s1631_s10 }
  0x74   : > { %389 = vrot.lane.b32.xlu1 %v1865_v3, %s1632_s11  ;;  %387 = vrot.lane.b32.xlu0 %v1855_v1, %s1632_s11 }
  0x78   : > { %393 = vrot.lane.b32.xlu1 %v1862_v2, %s1632_s11  ;;  %391 = vrot.lane.b32.xlu0 %v1852_v0, %s1632_s11 }
  0x7c   : > { %418 = vrot.lane.b32.xlu1 %v1865_v3, %s1633_s14  ;;  %416 = vrot.lane.b32.xlu0 %v1855_v1, %s1633_s14 }
  0x80   : > { %422 = vrot.lane.b32.xlu1 %v1862_v2, %s1633_s14  ;;  %420 = vrot.lane.b32.xlu0 %v1852_v0, %s1633_s14 }
  0x84   : > { %447 = vrot.lane.b32.xlu1 %v1865_v3, %s1634_s16  ;;  %445 = vrot.lane.b32.xlu0 %v1855_v1, %s1634_s16 }
  0x88   : > { %451 = vrot.lane.b32.xlu1 %v1862_v2, %s1634_s16  ;;  %449 = vrot.lane.b32.xlu0 %v1852_v0, %s1634_s16 }
  0x8c   : > { %492 = vrot.lane.b32.xlu1 %v1865_v3, %s1635_s12  ;;  %490 = vrot.lane.b32.xlu0 %v1855_v1, %s1635_s12 }
  0x90   : > { %496 = vrot.lane.b32.xlu1 %v1862_v2, %s1635_s12  ;;  %494 = vrot.lane.b32.xlu0 %v1852_v0, %s1635_s12 }
  0x94   : > { %521 = vrot.lane.b32.xlu1 %v1865_v3, %s1636_s13  ;;  %519 = vrot.lane.b32.xlu0 %v1855_v1, %s1636_s13 }
  0x98   : > { %525 = vrot.lane.b32.xlu1 %v1862_v2, %s1636_s13  ;;  %523 = vrot.lane.b32.xlu0 %v1852_v0, %s1636_s13 }
  0x9c   : > { %550 = vrot.lane.b32.xlu1 %v1865_v3, %s1637_s21  ;;  %548 = vrot.lane.b32.xlu0 %v1855_v1, %s1637_s21 }
  0xa0   : > { %554 = vrot.lane.b32.xlu1 %v1862_v2, %s1637_s21  ;;  %552 = vrot.lane.b32.xlu0 %v1852_v0, %s1637_s21 }
  0xa4   : > { %579 = vrot.lane.b32.xlu1 %v1865_v3, %s1638_s23  ;;  %577 = vrot.lane.b32.xlu0 %v1855_v1, %s1638_s23 }
  0xa8   : > { %583 = vrot.lane.b32.xlu1 %v1862_v2, %s1638_s23  ;;  %581 = vrot.lane.b32.xlu0 %v1852_v0, %s1638_s23 }
  0xde   : > { %v361_v11 = vpop.permute.xlu1 %360  ;;  %v357_v12 = vpop.permute.xlu0 %356 }
  0xdf   : > { %v367_v15 = vsel %vm366_vm1, %v357_v12, %v361_v11  ;;  %v369_v16 = vsel %vm366_vm1, %v361_v11, %v357_v12  ;;  %v2006_v11 = vrot.slane %v1935_v10, %v460_v51  ;;  %v2009_v12 = vrot.slane %v1933_v9, %v476_v52 }
  0xe0   : > { %v379_v22 = vmul.f32 %v1939_v13, %v369_v16  ;;  %v380_v24 = vmul.f32 %v1942_v14, %v367_v15 }
  0xe2   : > { %v363_v17 = vpop.permute.xlu1 %362  ;;  %v359_v18 = vpop.permute.xlu0 %358 }
  0xe3   : > { %v368_v19 = vsel %vm366_vm1, %v359_v18, %v363_v17  ;;  %v370_v20 = vsel %vm366_vm1, %v363_v17, %v359_v18  ;;  %v505_v17 = vsub.s32 5, %v1928_v6  ;;  %v483_v18 = vmul.f32 %v1999_v5, %v1852_v0 }
  0xe4   : > { %v381_v23 = vmul.f32 %v1939_v13, %v370_v20  ;;  %v382_v25 = vmul.f32 %v1942_v14, %v368_v19  ;;  %v485_v19 = vmul.f32 %v1999_v5, %v1862_v2 }
  0xe6   : > { %v390_v26 = vpop.permute.xlu1 %389  ;;  %v388_v27 = vpop.permute.xlu0 %387  ;;  %v1302_v28 = vpack.c.bf16 %v382_v25, %v380_v24  ;;  %v1304_v29 = vpack.c.bf16 %v381_v23, %v379_v22  ;;  %v1318_v34 = vpack.c.bf16 %v485_v19, %v483_v18 }
  0xe8   : > { %1303 = vmatprep.subr.bf16.mxu0 %v1302_v28 }
  0xe9   : > { %1305 = vmatpush1.bf16.msra.mxu0 %v1304_v29 }
  0xea   : > { %v394_v32 = vpop.permute.xlu1 %393  ;;  %v392_v33 = vpop.permute.xlu0 %391 }
  0xeb   : > { %v397_v35 = vsel %vm395_vm2, %v390_v26, %v394_v32  ;;  %v399_v36 = vsel %vm395_vm2, %v394_v32, %v390_v26  ;;  %v396_v37 = vsel %vm395_vm2, %v388_v27, %v392_v33  ;;  %v398_v38 = vsel %vm395_vm2, %v392_v33, %v388_v27 }
  0xec   : > { %v410_v39 = vmul.f32 %v1959_v30, %v399_v36  ;;  %v411_v40 = vmul.f32 %v1962_v31, %v397_v35  ;;  %v408_v41 = vmul.f32 %v1959_v30, %v398_v38  ;;  %v409_v42 = vmul.f32 %v1962_v31, %v396_v37 }
  0xed   : > { %v482_v26 = vmul.f32 %v2009_v12, %v1855_v1  ;;  %v484_v27 = vmul.f32 %v2009_v12, %v1865_v3  ;;  %v2034_v35 = vrot.slane %v1933_v9, %v505_v17  ;;  %v2037_v36 = vrot.slane %v1935_v10, %v505_v17 }
  0xee   : > { %v419_v43 = vpop.permute.xlu1 %418  ;;  %v417_v44 = vpop.permute.xlu0 %416  ;;  %v1306_v45 = vpack.c.bf16 %v411_v40, %v409_v42  ;;  %v1308_v46 = vpack.c.bf16 %v410_v39, %v408_v41  ;;  %v534_v3 = vsub.s32 6, %v1928_v6 }
  0xef   : > { %v1320_v37 = vpack.c.bf16 %v484_v27, %v482_v26 }
  0xf0   : > { %1307 = vmatprep.subr.bf16.mxu0 %v1306_v45 }
  0xf1   : > { %1309 = vmatpush1.bf16.msra.mxu0 %v1308_v46 }
  0xf2   : > { %v423_v49 = vpop.permute.xlu1 %422  ;;  %v421_v50 = vpop.permute.xlu0 %420 }
  0xf3   : > { %v426_v53 = vsel %vm424_vm3, %v419_v43, %v423_v49  ;;  %v428_v54 = vsel %vm424_vm3, %v423_v49, %v419_v43  ;;  %v425_v55 = vsel %vm424_vm3, %v417_v44, %v421_v50  ;;  %v427_v56 = vsel %vm424_vm3, %v421_v50, %v417_v44 }
  0xf4   : > { %v439_v57 = vmul.f32 %v1979_v47, %v428_v54  ;;  %v440_v58 = vmul.f32 %v1982_v48, %v426_v53  ;;  %v437_v59 = vmul.f32 %v1979_v47, %v427_v56  ;;  %v438_v60 = vmul.f32 %v1982_v48, %v425_v55 }
  0xf5   : > { %v2054_v53 = vrot.slane %v1933_v9, %v534_v3  ;;  %v2057_v54 = vrot.slane %v1935_v10, %v534_v3 }
  0xf6   : > { %v448_v61 = vpop.permute.xlu1 %447  ;;  %v446_v62 = vpop.permute.xlu0 %445  ;;  %v1310_v63 = vpack.c.bf16 %v440_v58, %v438_v60  ;;  %v1312_v4 = vpack.c.bf16 %v439_v57, %v437_v59  ;;  %v563_v57 = vsub.s32 7, %v1928_v6 }
  0xf8   : > { %1311 = vmatprep.subr.bf16.mxu0 %v1310_v63  ;;  %v2074_v19 = vrot.slane %v1933_v9, %v563_v57 }
  0xf9   : > { %1313 = vmatpush1.bf16.msra.mxu0 %v1312_v4 }
  0xfa   : > { %v452_v15 = vpop.permute.xlu1 %451  ;;  %v450_v16 = vpop.permute.xlu0 %449 }
  0xfb   : > { %v455_v20 = vsel %vm453_vm4, %v448_v61, %v452_v15  ;;  %v457_v21 = vsel %vm453_vm4, %v452_v15, %v448_v61  ;;  %v454_v22 = vsel %vm453_vm4, %v446_v62, %v450_v16  ;;  %v456_v23 = vsel %vm453_vm4, %v450_v16, %v446_v62 }
  0xfc   : > { %v468_v24 = vmul.f32 %v2003_v8, %v457_v21  ;;  %v469_v25 = vmul.f32 %v2006_v11, %v455_v20  ;;  %v466_v0 = vmul.f32 %v2003_v8, %v456_v23  ;;  %v467_v2 = vmul.f32 %v2006_v11, %v454_v22 }
  0xfd   : > { %v2077_v20 = vrot.slane %v1935_v10, %v563_v57 }
  0xfe   : > { %v493_v28 = vpop.permute.xlu1 %492  ;;  %v491_v29 = vpop.permute.xlu0 %490  ;;  %v1314_v32 = vpack.c.bf16 %v469_v25, %v467_v2  ;;  %v1316_v33 = vpack.c.bf16 %v468_v24, %v466_v0 }
 0x100   : > { %1315 = vmatprep.subr.bf16.mxu0 %v1314_v32 }
 0x101   : > { %1317 = vmatpush1.bf16.msra.mxu0 %v1316_v33  ;;  %v2092_v33 = vld [vmem:[#allocation3 + $0x10] ss:$0 sm:$0xff] }
 0x102   : > { %v497_v1 = vpop.permute.xlu1 %496  ;;  %v495_v38 = vpop.permute.xlu0 %494  ;;  %1319 = vmatprep.subr.bf16.mxu0 %v1318_v34  ;;  %v2094_v34 = vld [vmem:[#allocation3 + $0x18] ss:$0 sm:$0xff] }
 0x103   : > { %v500_v39 = vsel %vm498_vm5, %v493_v28, %v497_v1  ;;  %v502_v40 = vsel %vm498_vm5, %v497_v1, %v493_v28  ;;  %v499_v41 = vsel %vm498_vm5, %v491_v29, %v495_v38  ;;  %v501_v42 = vsel %vm498_vm5, %v495_v38, %v491_v29 }
 0x104   : > { %v513_v43 = vmul.f32 %v2034_v35, %v500_v39  ;;  %v514_v44 = vmul.f32 %v2037_v36, %v502_v40  ;;  %v511_v45 = vmul.f32 %v2034_v35, %v499_v41  ;;  %v512_v46 = vmul.f32 %v2037_v36, %v501_v42 }
 0x105   : > { %1321 = vmatpush1.bf16.msra.mxu0 %v1320_v37 }
 0x106   : > { %v522_v49 = vpop.permute.xlu1 %521  ;;  %v520_v50 = vpop.permute.xlu0 %519  ;;  %v1322_v51 = vpack.c.bf16 %v514_v44, %v512_v46  ;;  %v1324_v52 = vpack.c.bf16 %v513_v43, %v511_v45 }
 0x108   : > { %1323 = vmatprep.subr.bf16.mxu0 %v1322_v51  ;;  %v608_v51 = vld [vmem:[#allocation6 + $0x10] sm:$0xff] }
 0x109   : > { %1325 = vmatpush1.bf16.msra.mxu0 %v1324_v52 }
 0x10a   : > { %v526_v55 = vpop.permute.xlu1 %525  ;;  %v524_v56 = vpop.permute.xlu0 %523 }
 0x10b   : > { %v529_v58 = vsel %vm527_vm6, %v522_v49, %v526_v55  ;;  %v531_v59 = vsel %vm527_vm6, %v526_v55, %v522_v49  ;;  %v528_v60 = vsel %vm527_vm6, %v520_v50, %v524_v56  ;;  %v530_v61 = vsel %vm527_vm6, %v524_v56, %v520_v50  ;;  %v606_v49 = vld [vmem:[#allocation6] sm:$0xff]  ;;  %v609_v50 = vld [vmem:[#allocation6 + $0x18] sm:$0xff] }
 0x10c   : > { %v542_v62 = vmul.f32 %v2054_v53, %v529_v58  ;;  %v543_v63 = vmul.f32 %v2057_v54, %v531_v59  ;;  %v540_v4 = vmul.f32 %v2054_v53, %v528_v60  ;;  %v541_v6 = vmul.f32 %v2057_v54, %v530_v61 }
 0x10e   : > { %v551_v15 = vpop.permute.xlu1 %550  ;;  %v549_v16 = vpop.permute.xlu0 %548  ;;  %v1326_v17 = vpack.c.bf16 %v543_v63, %v541_v6  ;;  %v1328_v18 = vpack.c.bf16 %v542_v62, %v540_v4 }
 0x110   : > { %1327 = vmatprep.subr.bf16.mxu0 %v1326_v17 }
 0x111   : > { %1329 = vmatpush1.bf16.msra.mxu0 %v1328_v18 }
 0x112   : > { %v555_v21 = vpop.permute.xlu1 %554  ;;  %v553_v22 = vpop.permute.xlu0 %552 }
 0x113   : > { %v558_v23 = vsel %vm556_vm7, %v551_v15, %v555_v21  ;;  %v560_v24 = vsel %vm556_vm7, %v555_v21, %v551_v15  ;;  %v557_v25 = vsel %vm556_vm7, %v549_v16, %v553_v22  ;;  %v559_v0 = vsel %vm556_vm7, %v553_v22, %v549_v16 }
 0x114   : > { %v571_v9 = vmul.f32 %v2074_v19, %v558_v23  ;;  %v572_v10 = vmul.f32 %v2077_v20, %v560_v24  ;;  %v569_v2 = vmul.f32 %v2074_v19, %v557_v25  ;;  %v570_v26 = vmul.f32 %v2077_v20, %v559_v0 }
 0x115   : > { %v1639_v15 = vmov 0  }
 0x116   : > { %v580_v27 = vpop.permute.xlu1 %579  ;;  %v578_v28 = vpop.permute.xlu0 %577  ;;  %v1330_v29 = vpack.c.bf16 %v572_v10, %v570_v26  ;;  %v1332_v32 = vpack.c.bf16 %v571_v9, %v569_v2  ;;  %1456 = vset.pattern.permute.xlu1 %v1639_v15  ;;  %1457 = vset.pattern.permute.xlu0 %v1639_v15 }
 0x118   : > { %1331 = vmatprep.subr.bf16.mxu0 %v1330_v29 }
 0x119   : > { %1333 = vmatpush1.bf16.msra.mxu0 %v1332_v32  ;;  %v760_v32 = vld [vmem:[%s2366_s3] sm:$0xff] }
 0x11a   : > { %v584_v37 = vpop.permute.xlu1 %583  ;;  %v582_v1 = vpop.permute.xlu0 %581 }
 0x11b   : > { %v587_v38 = vsel %vm585_vm8, %v580_v27, %v584_v37  ;;  %v589_v3 = vsel %vm585_vm8, %v584_v37, %v580_v27  ;;  %v586_v39 = vsel %vm585_vm8, %v578_v28, %v582_v1  ;;  %v588_v40 = vsel %vm585_vm8, %v582_v1, %v578_v28 }
 0x11c   : > { %v600_v41 = vmul.f32 %v2092_v33, %v587_v38  ;;  %v601_v42 = vmul.f32 %v2094_v34, %v589_v3  ;;  %v598_v43 = vmul.f32 %v2092_v33, %v586_v39  ;;  %v599_v44 = vmul.f32 %v2094_v34, %v588_v40  ;;  %v764_v38 = vld [vmem:[%s2367_s4] sm:$0xff]  ;;  %v761_v3 = vld [vmem:[%s2366_s3 + $0x8] sm:$0xff] }
 0x11e   : > { %v1334_v45 = vpack.c.bf16 %v601_v42, %v599_v44  ;;  %v1336_v46 = vpack.c.bf16 %v600_v41, %v598_v43  ;;  %v765_v43 = vld [vmem:[%s2367_s4 + $0x8] sm:$0xff] }
 0x120   : > { %1335 = vmatprep.subr.bf16.mxu0 %v1334_v45 }
 0x121   : > { %1337 = vmatpush1.bf16.msra.mxu0 %v1336_v46 }
 0x124   : > { %718 = vmatmul.mubr.f32.vlgmr.msra.gmra.mrb[0].mxu0 %v606_v49 }
 0x125   : > { %1292 = vmatprep.mubr.msk.f32.mxu0 %vm646_vm0, %v609_v50 }
 0x128   : > { %724 = vmatmul.mubr.f32.gmra.mrb[2].mxu0 %v608_v51 }
 0x1f7   : > { %v719_v52 = vpop.f32.mrb[0].mxu0 }
 0x1f8   : > { %v721_v55 = vpop.f32.mrb[1].mxu0  ;;  %v738_v56 = vmul.f32 %v719_v52, %v719_v52 }
 0x1f9   : > { %v730_v57 = vadd.f32 %v721_v55, %v719_v52  ;;  %v739_v58 = vmul.f32 %v721_v55, %v721_v55 }
 0x1fb   : > { %731 = vadd.xlane.f32.xlu0 %v730_v57  ;;  %v725_v59 = vpop.f32.mrb[2].mxu0  ;;  %v742_v60 = vadd.f32 %v739_v58, %v738_v56 }
 0x1fc   : > { %v2109_v61 = vpop.f32.mrb[3].mxu0  ;;  %v740_v62 = vmul.f32 %v725_v59, %v725_v59 }
 0x1fd   : > { %v741_v63 = vmul.f32 %v2109_v61, %v2109_v61  ;;  %v733_v4 = vadd.f32 %v2109_v61, %v725_v59 }
 0x1ff   : > { %743 = vadd.xlane.f32.xlu0 %v742_v60  ;;  %734 = vadd.xlane.f32.xlu1 %v733_v4  ;;  %v745_v6 = vadd.f32 %v741_v63, %v740_v62 }
 0x203   : > { %746 = vadd.xlane.f32.xlu0 %v745_v6 }
 0x288   : > { %v732_v16 = vpop.xlane.xlu0 %731 }
 0x289   : > { %v736_v17 = vmul.f32 0.00390625, %v732_v16 }
 0x28b   : > { %v750_v22 = vmul.f32 %v736_v17, %v736_v17 }
 0x28c   : > { %v744_v18 = vpop.xlane.xlu0 %743  ;;  %v735_v21 = vpop.xlane.xlu1 %734 }
 0x28d   : > { %v748_v23 = vmul.f32 0.00390625, %v744_v18  ;;  %v737_v24 = vmul.f32 0.00390625, %v735_v21 }
 0x28f   : > { %v752_v25 = vsub.f32 %v748_v23, %v750_v22  ;;  %v751_v0 = vmul.f32 %v737_v24, %v737_v24 }
 0x290   : > { %v747_v9 = vpop.xlane.xlu0 %746 }
 0x291   : > { %v754_v10 = vmax.f32 %v752_v25, 0.0  ;;  %v749_v2 = vmul.f32 0.00390625, %v747_v9 }
 0x293   : > { %v756_v26 = vadd.f32 1e-05, %v754_v10  ;;  %v753_v27 = vsub.f32 %v749_v2, %v751_v0 }
 0x295   : > { %1458 = vrsqrt.f32 %v756_v26  ;;  %v755_v28 = vmax.f32 %v753_v27, 0.0 }
 0x297   : > { %v757_v29 = vadd.f32 1e-05, %v755_v28 }
 0x299   : > { %1460 = vrsqrt.f32 %v757_v29 }
 0x29f   : > { %v1459_v37 = vpop.eup %1458 }
 0x2a0   : > { %v762_v1 = vmul.f32 %v1459_v37, %v760_v32 }
 0x2a2   : > { %772 = vperm.xlu1 %1456, %v762_v1   ;;  %v766_v39 = vmul.f32 %v762_v1, %v736_v17 }
 0x2a3   : > { %v1461_v40 = vpop.eup %1460 }
 0x2a4   : > { %v768_v41 = vsub.f32 %v764_v38, %v766_v39  ;;  %v763_v42 = vmul.f32 %v1461_v40, %v761_v3 }
 0x2a6   : > { %786 = vperm.xlu1 %1456, %v768_v41   ;;  %777 = vperm.xlu0 %1457, %v763_v42   ;;  %v767_v44 = vmul.f32 %v763_v42, %v737_v24 }
 0x2a8   : > { %v769_v45 = vsub.f32 %v765_v43, %v767_v44 }
 0x2aa   : > { %791 = vperm.xlu1 %1456, %v769_v45  }
 0x321   : > { %v773_v46 = vpop.permute.xlu1 %772 }
 0x322   : > { %v780_v49 = vmul.f32 %v773_v46, %v719_v52  ;;  %v781_v50 = vmul.f32 %v773_v46, %v721_v55 }
 0x325   : > { %v778_v51 = vpop.permute.xlu0 %777  ;;  %v787_v56 = vpop.permute.xlu1 %786 }
 0x326   : > { %v794_v57 = vadd.f32 %v787_v56, %v780_v49  ;;  %v795_v58 = vadd.f32 %v787_v56, %v781_v50  ;;  %v782_v60 = vmul.f32 %v778_v51, %v725_v59  ;;  %v783_v16 = vmul.f32 %v778_v51, %v2109_v61 }
 0x328   : > { %v798_v62 = vmax.f32 %v794_v57, 0.0  ;;  %v2126_v63 = vmax.f32 %v795_v58, 0.0 }
 0x329   : > { %v792_v4 = vpop.permute.xlu1 %791 }
 0x32a   : > { %v796_v6 = vadd.f32 %v792_v4, %v782_v60  ;;  %826 = vrot.lane.b32.xlu0 %v2126_v63, %s1632_s11  ;;  %802 = vrot.lane.b32.xlu1 %v798_v62, %s1631_s10  ;;  %v2135_v52 = vmul.f32 %v798_v62, %v2009_v12  ;;  %v797_v17 = vadd.f32 %v792_v4, %v783_v16 }
 0x32c   : > { %v800_v15 = vmax.f32 %v796_v6, 0.0  ;;  %v2148_v18 = vmax.f32 %v797_v17, 0.0 }
 0x32e   : > { %842 = vrot.lane.b32.xlu0 %v798_v62, %s1633_s14  ;;  %806 = vrot.lane.b32.xlu1 %v2126_v63, %s1631_s10  ;;  %v2138_v55 = vmul.f32 %v800_v15, %v2009_v12  ;;  %v971_v12 = vld [vmem:[#allocation8 + $0x8] sm:$0xff] }
 0x32f   : > { %1293 = vmatprep.mubr.msk.f32.mxu1 %vm646_vm0, %v971_v12 }
 0x330   : > { %v1356_v59 = vpack.c.bf16 %v2138_v55, %v2135_v52 }
 0x332   : > { %846 = vrot.lane.b32.xlu0 %v2126_v63, %s1633_s14  ;;  %822 = vrot.lane.b32.xlu1 %v798_v62, %s1632_s11 }
 0x336   : > { %862 = vrot.lane.b32.xlu0 %v798_v62, %s1634_s16  ;;  %804 = vrot.lane.b32.xlu1 %v800_v15, %s1631_s10 }
 0x33a   : > { %866 = vrot.lane.b32.xlu0 %v2126_v63, %s1634_s16  ;;  %808 = vrot.lane.b32.xlu1 %v2148_v18, %s1631_s10  ;;  %s2317_s10 = scalar_lea.hbm %s2371_s8, %s1301_s24 }
 0x33e   : > { %890 = vrot.lane.b32.xlu0 %v798_v62, %s1635_s12  ;;  %824 = vrot.lane.b32.xlu1 %v800_v15, %s1632_s11 }
 0x342   : > { %894 = vrot.lane.b32.xlu0 %v2126_v63, %s1635_s12  ;;  %828 = vrot.lane.b32.xlu1 %v2148_v18, %s1632_s11 }
 0x346   : > { %910 = vrot.lane.b32.xlu0 %v798_v62, %s1636_s13  ;;  %844 = vrot.lane.b32.xlu1 %v800_v15, %s1633_s14 }
 0x34a   : > { %914 = vrot.lane.b32.xlu0 %v2126_v63, %s1636_s13  ;;  %848 = vrot.lane.b32.xlu1 %v2148_v18, %s1633_s14  ;;  %s1554_s14 = scalar_lea.vmem %s2310_s20, 512 }
 0x34b   : > { %p1555_p12 = scmp.ne.s32.totalorder %s2310_s20, %s1554_s14 }
 0x34d   : > { %p1556_p8 = pnand %p1555_p12, %p2393_p7 }
 0x34e   : > { %930 = vrot.lane.b32.xlu0 %v798_v62, %s1637_s21  ;;  %864 = vrot.lane.b32.xlu1 %v800_v15, %s1634_s16 }
 0x34f   : > { %p1557_p11 = pneg %p1556_p8 }
 0x352   : > { %934 = vrot.lane.b32.xlu0 %v2126_v63, %s1637_s21  ;;  %868 = vrot.lane.b32.xlu1 %v2148_v18, %s1634_s16  ;;  %s1640_s16 = smov [#allocation9]  }
 0x356   : > { %950 = vrot.lane.b32.xlu0 %v798_v62, %s1638_s23  ;;  %892 = vrot.lane.b32.xlu1 %v800_v15, %s1635_s12 }
 0x35a   : > { %954 = vrot.lane.b32.xlu0 %v2126_v63, %s1638_s23  ;;  %896 = vrot.lane.b32.xlu1 %v2148_v18, %s1635_s12  ;;  %s1558_s12 = sshll.u32 %s1640_s16, 4  ;;  %s1559_s12 = int_to_ptr.vmem [resolvable:$false] %s1558_s12 }
 0x35b   : > { %p1561_p13 = scmp.lt.s32.totalorder %s2310_s20, %s1559_s12 }
 0x35e   : > { %912 = vrot.lane.b32.xlu1 %v800_v15, %s1636_s13 }
 0x362   : > { %916 = vrot.lane.b32.xlu1 %v2148_v18, %s1636_s13 }
 0x366   : > { %932 = vrot.lane.b32.xlu1 %v800_v15, %s1637_s21 }
 0x36a   : > { %936 = vrot.lane.b32.xlu1 %v2148_v18, %s1637_s21 }
 0x36e   : > { %952 = vrot.lane.b32.xlu1 %v800_v15, %s1638_s23 }
 0x372   : > { %956 = vrot.lane.b32.xlu1 %v2148_v18, %s1638_s23 }
 0x39c   : > { %v827_v61 = vpop.permute.xlu0 %826  ;;  %v803_v21 = vpop.permute.xlu1 %802 }
 0x3a0   : > { %v843_v22 = vpop.permute.xlu0 %842  ;;  %v807_v23 = vpop.permute.xlu1 %806 }
 0x3a1   : > { %v810_v10 = vsel %vm366_vm1, %v803_v21, %v807_v23  ;;  %v812_v2 = vsel %vm366_vm1, %v807_v23, %v803_v21 }
 0x3a2   : > { %v814_v29 = vmul.f32 %v812_v2, %v1939_v13  ;;  %v815_v37 = vmul.f32 %v810_v10, %v1942_v14 }
 0x3a4   : > { %v847_v24 = vpop.permute.xlu0 %846  ;;  %v823_v25 = vpop.permute.xlu1 %822 }
 0x3a5   : > { %v830_v41 = vsel %vm395_vm2, %v823_v25, %v827_v61  ;;  %v832_v42 = vsel %vm395_vm2, %v827_v61, %v823_v25  ;;  %v850_v58 = vsel %vm424_vm3, %v843_v22, %v847_v24  ;;  %v852_v60 = vsel %vm424_vm3, %v847_v24, %v843_v22 }
 0x3a6   : > { %v835_v45 = vmul.f32 %v830_v41, %v1962_v31  ;;  %v855_v15 = vmul.f32 %v850_v58, %v1982_v48 }
 0x3a8   : > { %v805_v0 = vpop.permute.xlu1 %804  ;;  %v863_v9 = vpop.permute.xlu0 %862 }
 0x3ac   : > { %v809_v26 = vpop.permute.xlu1 %808  ;;  %v867_v38 = vpop.permute.xlu0 %866 }
 0x3ad   : > { %v811_v27 = vsel %vm366_vm1, %v805_v0, %v809_v26  ;;  %v813_v28 = vsel %vm366_vm1, %v809_v26, %v805_v0  ;;  %v870_v23 = vsel %vm453_vm4, %v863_v9, %v867_v38  ;;  %v872_v24 = vsel %vm453_vm4, %v867_v38, %v863_v9 }
 0x3ae   : > { %v816_v32 = vmul.f32 %v813_v28, %v1939_v13  ;;  %v817_v1 = vmul.f32 %v811_v27, %v1942_v14  ;;  %v834_v14 = vmul.f32 %v832_v42, %v1959_v30  ;;  %v874_v10 = vmul.f32 %v872_v24, %v2003_v8 }
 0x3af   : > { %v875_v2 = vmul.f32 %v870_v23, %v2006_v11 }
 0x3b0   : > { %v825_v3 = vpop.permute.xlu1 %824  ;;  %v1338_v39 = vpack.c.bf16 %v817_v1, %v815_v37  ;;  %v1340_v40 = vpack.c.bf16 %v816_v32, %v814_v29  ;;  %v891_v46 = vpop.permute.xlu0 %890  ;;  %v883_v37 = vmul.f32 %v2126_v63, %v1999_v5 }
 0x3b2   : > { %1339 = vmatprep.subr.bf16.mxu1 %v1338_v39 }
 0x3b3   : > { %1341 = vmatpush1.bf16.msra.mxu1 %v1340_v40 }
 0x3b4   : > { %v829_v43 = vpop.permute.xlu1 %828  ;;  %v895_v62 = vpop.permute.xlu0 %894 }
 0x3b5   : > { %v831_v13 = vsel %vm395_vm2, %v825_v3, %v829_v43  ;;  %v833_v44 = vsel %vm395_vm2, %v829_v43, %v825_v3  ;;  %v900_v38 = vsel %vm498_vm5, %v895_v62, %v891_v46 }
 0x3b6   : > { %v836_v49 = vmul.f32 %v833_v44, %v1959_v30  ;;  %v837_v50 = vmul.f32 %v831_v13, %v1962_v31  ;;  %v854_v31 = vmul.f32 %v852_v60, %v1979_v47 }
 0x3b8   : > { %v845_v51 = vpop.permute.xlu1 %844  ;;  %v1342_v56 = vpack.c.bf16 %v837_v50, %v835_v45  ;;  %v1344_v57 = vpack.c.bf16 %v836_v49, %v834_v14  ;;  %v911_v22 = vpop.permute.xlu0 %910 }
 0x3ba   : > { %1343 = vmatprep.subr.bf16.mxu1 %v1342_v56 }
 0x3bb   : > { %1345 = vmatpush1.bf16.msra.mxu1 %v1344_v57 }
 0x3bc   : > { %v849_v4 = vpop.permute.xlu1 %848  ;;  %v915_v9 = vpop.permute.xlu0 %914 }
 0x3bd   : > { %v851_v6 = vsel %vm424_vm3, %v845_v51, %v849_v4  ;;  %v853_v30 = vsel %vm424_vm3, %v849_v4, %v845_v51  ;;  %v918_v44 = vsel %vm527_vm6, %v911_v22, %v915_v9  ;;  %v920_v14 = vsel %vm527_vm6, %v915_v9, %v911_v22 }
 0x3be   : > { %v856_v16 = vmul.f32 %v853_v30, %v1979_v47  ;;  %v857_v17 = vmul.f32 %v851_v6, %v1982_v48  ;;  %v885_v48 = vmul.f32 %v2148_v18, %v1999_v5  ;;  %v898_v18 = vsel %vm498_vm5, %v891_v46, %v895_v62 }
 0x3bf   : > { %v902_v39 = vmul.f32 %v898_v18, %v2034_v35  ;;  %v903_v5 = vmul.f32 %v900_v38, %v2037_v36  ;;  %v922_v52 = vmul.f32 %v918_v44, %v2054_v53  ;;  %v923_v55 = vmul.f32 %v920_v14, %v2057_v54 }
 0x3c0   : > { %v865_v12 = vpop.permute.xlu1 %864  ;;  %v1346_v61 = vpack.c.bf16 %v857_v17, %v855_v15  ;;  %v1348_v21 = vpack.c.bf16 %v856_v16, %v854_v31  ;;  %v1354_v1 = vpack.c.bf16 %v885_v48, %v883_v37  ;;  %v931_v63 = vpop.permute.xlu0 %930 }
 0x3c2   : > { %1347 = vmatprep.subr.bf16.mxu1 %v1346_v61 }
 0x3c3   : > { %1349 = vmatpush1.bf16.msra.mxu1 %v1348_v21 }
 0x3c4   : > { %v869_v25 = vpop.permute.xlu1 %868  ;;  %v935_v45 = vpop.permute.xlu0 %934 }
 0x3c5   : > { %v871_v0 = vsel %vm453_vm4, %v865_v12, %v869_v25  ;;  %v873_v47 = vsel %vm453_vm4, %v869_v25, %v865_v12  ;;  %v938_v58 = vsel %vm556_vm7, %v931_v63, %v935_v45  ;;  %v940_v60 = vsel %vm556_vm7, %v935_v45, %v931_v63 }
 0x3c6   : > { %v876_v26 = vmul.f32 %v873_v47, %v2003_v8  ;;  %v877_v27 = vmul.f32 %v871_v0, %v2006_v11  ;;  %v943_v6 = vmul.f32 %v940_v60, %v2077_v20 }
 0x3c8   : > { %v893_v28 = vpop.permute.xlu1 %892  ;;  %v1350_v29 = vpack.c.bf16 %v877_v27, %v875_v2  ;;  %v1352_v32 = vpack.c.bf16 %v876_v26, %v874_v10  ;;  %v951_v57 = vpop.permute.xlu0 %950  ;;  %v970_v10 = vld [vmem:[#allocation8] sm:$0xff]  ;;  %v973_v2 = vld [vmem:[#allocation8 + $0x18] sm:$0xff]  ;;  %v972_v26 = vld [vmem:[#allocation8 + $0x10] sm:$0xff] }
 0x3ca   : > { %1351 = vmatprep.subr.bf16.mxu1 %v1350_v29 }
 0x3cb   : > { %1353 = vmatpush1.bf16.msra.mxu1 %v1352_v32 }
 0x3cc   : > { %1355 = vmatprep.subr.bf16.mxu1 %v1354_v1  ;;  %v897_v8 = vpop.permute.xlu1 %896  ;;  %v955_v15 = vpop.permute.xlu0 %954 }
 0x3cd   : > { %v899_v11 = vsel %vm498_vm5, %v893_v28, %v897_v8  ;;  %v901_v3 = vsel %vm498_vm5, %v897_v8, %v893_v28  ;;  %v958_v61 = vsel %vm585_vm8, %v951_v57, %v955_v15  ;;  %v960_v21 = vsel %vm585_vm8, %v955_v15, %v951_v57 }
 0x3ce   : > { %v904_v40 = vmul.f32 %v899_v11, %v2034_v35  ;;  %v905_v41 = vmul.f32 %v901_v3, %v2037_v36  ;;  %v963_v24 = vmul.f32 %v2094_v34, %v960_v21  ;;  %v1467_v21 = vld [vmem:[%s1849_s26 + $0x8] sm:$0xff] }
 0x3cf   : > { %1357 = vmatpush1.bf16.msra.mxu1 %v1356_v59 }
 0x3d0   : > { %v913_v42 = vpop.permute.xlu1 %912  ;;  %v1358_v43 = vpack.c.bf16 %v905_v41, %v903_v5  ;;  %v1360_v13 = vpack.c.bf16 %v904_v40, %v902_v39 }
 0x3d2   : > { %1359 = vmatprep.subr.bf16.mxu1 %v1358_v43 }
 0x3d3   : > { %1361 = vmatpush1.bf16.msra.mxu1 %v1360_v13 }
 0x3d4   : > { %v917_v46 = vpop.permute.xlu1 %916 }
 0x3d5   : > { %v919_v35 = vsel %vm527_vm6, %v913_v42, %v917_v46  ;;  %v921_v36 = vsel %vm527_vm6, %v917_v46, %v913_v42 }
 0x3d6   : > { %v924_v59 = vmul.f32 %v919_v35, %v2054_v53  ;;  %v925_v49 = vmul.f32 %v921_v36, %v2057_v54  ;;  %v942_v54 = vmul.f32 %v938_v58, %v2074_v19  ;;  %v1123_v36 = vld [vmem:[%s2369_s6] sm:$0xff]  ;;  %v1128_v58 = vld [vmem:[%s2370_s7 + $0x8] sm:$0xff] }
 0x3d8   : > { %v933_v50 = vpop.permute.xlu1 %932  ;;  %v1362_v51 = vpack.c.bf16 %v925_v49, %v923_v55  ;;  %v1364_v56 = vpack.c.bf16 %v924_v59, %v922_v52  ;;  %v1127_v59 = vld [vmem:[%s2370_s7] sm:$0xff]  ;;  %v1124_v49 = vld [vmem:[%s2369_s6 + $0x8] sm:$0xff] }
 0x3da   : > { %1363 = vmatprep.subr.bf16.mxu1 %v1362_v51 }
 0x3db   : > { %1365 = vmatpush1.bf16.msra.mxu1 %v1364_v56 }
 0x3dc   : > { %v937_v62 = vpop.permute.xlu1 %936 }
 0x3dd   : > { %v939_v4 = vsel %vm556_vm7, %v933_v50, %v937_v62  ;;  %v941_v53 = vsel %vm556_vm7, %v937_v62, %v933_v50 }
 0x3de   : > { %v944_v30 = vmul.f32 %v939_v4, %v2074_v19  ;;  %v945_v31 = vmul.f32 %v941_v53, %v2077_v20  ;;  %v962_v20 = vmul.f32 %v2092_v33, %v958_v61 }
 0x3e0   : > { %v953_v16 = vpop.permute.xlu1 %952  ;;  %v1366_v17 = vpack.c.bf16 %v945_v31, %v943_v6  ;;  %v1368_v12 = vpack.c.bf16 %v944_v30, %v942_v54 }
 0x3e2   : > { %1367 = vmatprep.subr.bf16.mxu1 %v1366_v17 }
 0x3e3   : > { %1369 = vmatpush1.bf16.msra.mxu1 %v1368_v12  ;;  %v1466_v12 = vld [vmem:[%s1849_s26] sm:$0xff] }
 0x3e4   : > { %v957_v22 = vpop.permute.xlu1 %956 }
 0x3e5   : > { %v959_v23 = vsel %vm585_vm8, %v953_v16, %v957_v22  ;;  %v961_v19 = vsel %vm585_vm8, %v957_v22, %v953_v16 }
 0x3e6   : > { %v964_v25 = vmul.f32 %v2092_v33, %v959_v23  ;;  %v965_v0 = vmul.f32 %v2094_v34, %v961_v19 }
 0x3e8   : > { %v1370_v47 = vpack.c.bf16 %v965_v0, %v963_v24  ;;  %v1372_v48 = vpack.c.bf16 %v964_v25, %v962_v20  ;;  %v1468_v24 = vld [vmem:[%s1849_s26 + $0x10] sm:$0xff]  ;;  %v1469_v0 = vld [vmem:[%s1849_s26 + $0x18] sm:$0xff]  ;;  %s1560_s26 = scalar_lea.vmem %s1559_s12, 1024 }
 0x3e9   : > { %p1562_p1 = scmp.lt.s32.totalorder %s1560_s26, %s1554_s14 }
 0x3ea   : > { %1371 = vmatprep.subr.bf16.mxu1 %v1370_v47 }
 0x3eb   : > { %1373 = vmatpush1.bf16.msra.mxu1 %v1372_v48  ;;  %p1563_p6 = por %p1562_p1, %p1561_p13 }
 0x3ed   : > { %p1564_p9 = pnand %p1563_p6, %p1557_p11 }
 0x3ee   : > { %1081 = vmatmul.mubr.f32.vlgmr.msra.gmra.mrb[0].mxu1 %v970_v10 }
 0x3ef   : > { %1294 = vmatprep.mubr.msk.f32.mxu1 %vm646_vm0, %v973_v2 }
 0x3f2   : > { %1087 = vmatmul.mubr.f32.gmra.mrb[2].mxu1 %v972_v26 }
 0x4c1   : > { %v1082_v7 = vpop.f32.mrb[0].mxu1 }
 0x4c2   : > { %v1084_v27 = vpop.f32.mrb[1].mxu1  ;;  %v1101_v9 = vmul.f32 %v1082_v7, %v1082_v7 }
 0x4c3   : > { %v1093_v28 = vadd.f32 %v1084_v27, %v1082_v7  ;;  %v1102_v29 = vmul.f32 %v1084_v27, %v1084_v27 }
 0x4c5   : > { %1094 = vadd.xlane.f32.xlu0 %v1093_v28  ;;  %v1088_v33 = vpop.f32.mrb[2].mxu1  ;;  %v1105_v32 = vadd.f32 %v1102_v29, %v1101_v9 }
 0x4c6   : > { %v1090_v34 = vpop.f32.mrb[3].mxu1  ;;  %v1103_v37 = vmul.f32 %v1088_v33, %v1088_v33 }
 0x4c7   : > { %v1104_v1 = vmul.f32 %v1090_v34, %v1090_v34  ;;  %v1096_v18 = vadd.f32 %v1090_v34, %v1088_v33 }
 0x4c9   : > { %1106 = vadd.xlane.f32.xlu0 %v1105_v32  ;;  %1097 = vadd.xlane.f32.xlu1 %v1096_v18  ;;  %v1108_v38 = vadd.f32 %v1104_v1, %v1103_v37 }
 0x4cd   : > { %1109 = vadd.xlane.f32.xlu0 %v1108_v38 }
 0x552   : > { %v1095_v8 = vpop.xlane.xlu0 %1094 }
 0x553   : > { %v1099_v11 = vmul.f32 0.00390625, %v1095_v8 }
 0x555   : > { %v1113_v5 = vmul.f32 %v1099_v11, %v1099_v11 }
 0x556   : > { %v1107_v3 = vpop.xlane.xlu0 %1106  ;;  %v1098_v39 = vpop.xlane.xlu1 %1097 }
 0x557   : > { %v1111_v63 = vmul.f32 0.00390625, %v1107_v3  ;;  %v1100_v40 = vmul.f32 0.00390625, %v1098_v39 }
 0x559   : > { %v1115_v41 = vsub.f32 %v1111_v63, %v1113_v5  ;;  %v1114_v42 = vmul.f32 %v1100_v40, %v1100_v40 }
 0x55a   : > { %v1110_v43 = vpop.xlane.xlu0 %1109 }
 0x55b   : > { %v1117_v13 = vmax.f32 %v1115_v41, 0.0  ;;  %v1112_v44 = vmul.f32 0.00390625, %v1110_v43 }
 0x55d   : > { %v1119_v14 = vadd.f32 1e-05, %v1117_v13  ;;  %v1116_v45 = vsub.f32 %v1112_v44, %v1114_v42 }
 0x55f   : > { %1462 = vrsqrt.f32 %v1119_v14  ;;  %v1118_v46 = vmax.f32 %v1116_v45, 0.0 }
 0x561   : > { %v1120_v35 = vadd.f32 1e-05, %v1118_v46 }
 0x563   : > { %1464 = vrsqrt.f32 %v1120_v35 }
 0x569   : > { %v1463_v52 = vpop.eup %1462 }
 0x56a   : > { %v1125_v55 = vmul.f32 %v1463_v52, %v1123_v36 }
 0x56c   : > { %1135 = vperm.xlu1 %1456, %v1125_v55   ;;  %v1129_v50 = vmul.f32 %v1125_v55, %v1099_v11 }
 0x56d   : > { %v1465_v51 = vpop.eup %1464 }
 0x56e   : > { %v1131_v56 = vsub.f32 %v1127_v59, %v1129_v50  ;;  %v1126_v57 = vmul.f32 %v1465_v51, %v1124_v49 }
 0x570   : > { %1149 = vperm.xlu1 %1456, %v1131_v56   ;;  %1140 = vperm.xlu0 %1457, %v1126_v57   ;;  %v1130_v60 = vmul.f32 %v1126_v57, %v1100_v40 }
 0x572   : > { %v1132_v62 = vsub.f32 %v1128_v58, %v1130_v60 }
 0x574   : > { %1154 = vperm.xlu1 %1456, %v1132_v62  }
 0x5eb   : > { %v1136_v4 = vpop.permute.xlu1 %1135 }
 0x5ec   : > { %v1143_v53 = vmul.f32 %v1136_v4, %v1082_v7  ;;  %v1144_v54 = vmul.f32 %v1136_v4, %v1084_v27 }
 0x5ef   : > { %v1141_v6 = vpop.permute.xlu0 %1140  ;;  %v1150_v30 = vpop.permute.xlu1 %1149 }
 0x5f0   : > { %v1157_v31 = vadd.f32 %v1150_v30, %v1143_v53  ;;  %v1158_v15 = vadd.f32 %v1150_v30, %v1144_v54  ;;  %v1145_v16 = vmul.f32 %v1141_v6, %v1088_v33  ;;  %v1146_v17 = vmul.f32 %v1141_v6, %v1090_v34 }
 0x5f2   : > { %v1161_v61 = vadd.f32 %v1466_v12, %v1157_v31  ;;  %v1162_v22 = vadd.f32 %v1467_v21, %v1158_v15 }
 0x5f3   : > { %v1155_v23 = vpop.permute.xlu1 %1154 }
 0x5f4   : > { %1165 = vst [vmem:[%s342_s29] sm:$0xff] %v1161_v61  ;;  %1166 = vst [vmem:[%s342_s29 + $0x8] sm:$0xff] %v1162_v22  ;;  %v1159_v19 = vadd.f32 %v1155_v23, %v1145_v16  ;;  %v1160_v20 = vadd.f32 %v1155_v23, %v1146_v17 }
 0x5f6   : > { %v1163_v25 = vadd.f32 %v1468_v24, %v1159_v19  ;;  %v1164_v47 = vadd.f32 %v1469_v0, %v1160_v20 }
 0x5f8   : > { %1167 = vst [vmem:[%s342_s29 + $0x10] sm:$0xff] %v1163_v25  ;;  %1168 = vst [vmem:[%s342_s29 + $0x18] sm:$0xff] %v1164_v47 }
 0x5f9   : > { %1567 = shalt.err (!%p1564_p9)
}
 0x5fa   : > { %s1568_s13 = scalar_lea.hbm %s2317_s10, 512  ;;  %s1572_s25 = scalar_lea.hbm %s2371_s8, 1024 }
 0x5fb   : > { %p1569_p2 = scmp.ne.s32.totalorder %s2317_s10, %s1568_s13  ;;  %p1573_p5 = scmp.lt.u32.totalorder %s2317_s10, %s2371_s8 }
 0x5fc   : > { %p1574_p10 = scmp.lt.u32.totalorder %s1572_s25, %s1568_s13  ;;  %p1576_p12 = scmp.lt.u32.totalorder %s1568_s13, %s2317_s10 }
 0x5fd   : > { %p1570_p0 = pnand %p1569_p2, %p2393_p7 }
 0x5fe   : > { %p1575_p4 = por %p1574_p10, %p1573_p5 }
 0x5ff   : > { %p1571_p3 = pneg %p1570_p0 }
 0x600   : > { %p1577_p8 = por %p1576_p12, %p1575_p4 }
 0x602   : > { %p1578_p11 = pnand %p1577_p8, %p1571_p3 }
 0x604   : > { %1581 = shalt.err (!%p1578_p11)
}
 0x605   : > { %s1641_s29 = smov 256  }
 0x606   : > { %1386 = dma.vmem_to_hbm [thread:$0]  (%p2393_p7), %s2310_s20, 512, %s2317_s10, %s2321_s9, %s1641_s29, %s1641_s29, %s1632_s11  }
 0x607 PF: > { %s2394_s24 = sld [smem:[#allocation16_spill]]  ;;  %p1408_p13 = scmp.ge.s32.totalorder %s1624_s30, 2 }
 0x608   : > { %s1198_s18 = sand.u32 1, %s1612_s27  }
 0x609   : > { %s1199_s17 = scalar_lea.sflag [#allocation5], %s1198_s18 }
 0x60d   : > { %p2395_p1 = scmp.ne.s32.totalorder %s2394_s24, 0 }
 0x60f   : > { %p1399_p6 = pnand %p1408_p13, %p2395_p1 }
 0x611   : > { %1607 = dma.done.wait (!%p1399_p6), %s1199_s17, 512  }
 0x612   : > { %1609 = vsyncadd (!%p1399_p6), %s1199_s17, 4294966784  ;;  %s2396_s30 = sld [smem:[#allocation14_spill]]  ;;  %s2397_s14 = sld [smem:[#allocation13_spill]] }
 0x613   : > { %s2398_s29 = sld [smem:[#allocation15_spill]]  ;;  %s2399_s27 = smov %s1616_s28 }
 0x618   : > { %p20_p9 = scmp.ge.s32.totalorder %s2396_s30, 4   ;;  %s2400_s28 = smov %s2397_s14 }
 0x61a   :  { %22 = sbr.rel (!%p20_p9) target bundleno = 5 (0x5), region = 100 }
 0x621   :  { %1204 = vsyncpa [#allocation4], 1 }
 0x622   :  { %1206 = vsyncpa [#allocation4 + $0x1], 1 }
 0x623   :  { %1207 = vsyncpa [#allocation7], 1 }
 0x624   :  { %1208 = vsyncpa [#allocation5], 1 }
 0x625   :  { %1210 = vsyncpa [#allocation5 + $0x1], 1 }

</bundles_post_ra>
